<compile_context>
chip_gen: v7x
topology: tpu7x:2x2x1
jax: 0.10.0
libtpu: 0.0.40
codegen_flags: <defaults>
</compile_context>

<pallas_src>
import jax
import jax.numpy as jnp
import numpy as np
from jax import lax
from jax.experimental import pallas as pl
from jax.experimental.pallas import tpu as pltpu

QMIN = 0.0
QMAX = 255.0


def _default_vmem_limit():
    # ~0.75 * physical VMEM, capped at 100 MiB: ~96 MiB on v5e/v6e (128 MiB physical),
    # ~48 MiB on v7x (64 MiB physical).  Conservative fallback if the query fails.
    try:
        cap = int(pltpu.get_tpu_info().vmem_capacity_bytes)
    except Exception:
        cap = 64 * 1024 * 1024
    return min(cap * 3 // 4, 100 * 1024 * 1024)


_VMEM_LIMIT = _default_vmem_limit()


def _quantize(v, inv_s, zp):
    """clamp(round(v / s + zp)) with the division folded into a reciprocal multiply."""
    return jnp.clip(jnp.round(v * inv_s + zp), QMIN, QMAX)


def _divisor_tiles(n):
    """Divisors of n that are multiples of 8 (plus n itself), descending."""
    return sorted({d for d in range(8, n + 1, 8) if n % d == 0} | {n}, reverse=True)


# ----------------------------------------------------------------------------
# Fused quantize + pad + conv + bias + rescale kernel (+ per-tile y min/max).
# Geometry: 3x3, stride 1, "same" padding (what the module's conv uses).
# ----------------------------------------------------------------------------
def _qconv_kernel(params_ref, x_ref, w_ref, b_ref,
                  o_ref, omin_ref, omax_ref, xq_pad_ref):
    # params_ref: SMEM f32[3] = [inv_si, zpi, inv_(si*sw)]
    # x_ref:      (H, W, C)        raw f32 input of batch element n (resident across ht)
    # w_ref:      (KH, KW*C, O)    pre-quantized bf16 weight, resident
    # b_ref:      (1, O)           bias, resident
    # o_ref:      (TILE_H, W, O)   output row tile (f32)
    # omin_ref:   (1, 1)           per-tile min of y
    # omax_ref:   (1, 1)           per-tile max of y
    # xq_pad_ref: VMEM (TILE_H+2, W+2, C) bf16  quantized, zero-padded input window
    ht = pl.program_id(1)
    n_ht = pl.num_programs(1)

    _, W, C = x_ref.shape
    KH, KC, O = w_ref.shape
    KW = KC // C
    TILE_H = o_ref.shape[0]

    inv_si = params_ref[0]
    zpi = params_ref[1]
    inv_si_sw = params_ref[2]

    r0 = pl.multiple_of(ht * TILE_H, TILE_H)

    # ---- quantized, zero-padded window; only the border is zeroed -------------------
    # Padding stays in the quantized domain (matches conv2d's zero padding of xq).
    zero_col = jnp.zeros((TILE_H + 2, 1, C), jnp.bfloat16)
    xq_pad_ref[:, 0:1, :] = zero_col
    xq_pad_ref[:, W + 1:W + 2, :] = zero_col

    xq_pad_ref[1:TILE_H + 1, 1:W + 1, :] = _quantize(
        x_ref[pl.ds(r0, TILE_H), :, :], inv_si, zpi).astype(jnp.bfloat16)

    @pl.when(ht > 0)
    def _():  # top halo row from the neighbouring tile
        xq_pad_ref[0:1, 1:W + 1, :] = _quantize(
            x_ref[pl.ds(r0 - 1, 1), :, :], inv_si, zpi).astype(jnp.bfloat16)

    @pl.when(ht == 0)
    def _():  # image border -> zero pad
        xq_pad_ref[0:1, 1:W + 1, :] = jnp.zeros((1, W, C), jnp.bfloat16)

    @pl.when(ht < n_ht - 1)
    def _():  # bottom halo row
        xq_pad_ref[TILE_H + 1:TILE_H + 2, 1:W + 1, :] = _quantize(
            x_ref[pl.ds(r0 + TILE_H, 1), :, :], inv_si, zpi).astype(jnp.bfloat16)

    @pl.when(ht == n_ht - 1)
    def _():  # image border -> zero pad
        xq_pad_ref[TILE_H + 1:TILE_H + 2, 1:W + 1, :] = jnp.zeros((1, W, C), jnp.bfloat16)

    # ---- KW folded into the contraction: K = KW*C ------------------------------------
    # Only KW shifted copies of the window are materialized (lane concat); the KH shift
    # is a cheap leading-dim slice.
    x_cat = jnp.concatenate(
        [xq_pad_ref[:, kw:kw + W, :] for kw in range(KW)], axis=-1)  # (TILE_H+2, W, KW*C)

    w_all = w_ref[...]                           # (KH, KW*C, O) bf16, integers 0..255
    acc = None
    for kh in range(KH):
        xs = x_cat[kh:kh + TILE_H, :, :]         # (TILE_H, W, KW*C)
        p = lax.dot_general(xs, w_all[kh], (((2,), (0,)), ((), ())),
                            preferred_element_type=jnp.float32)
        acc = p if acc is None else acc + p      # register accumulation, no VMEM acc

    y = (acc + b_ref[...].reshape(1, 1, O)) * inv_si_sw
    o_ref[...] = y
    omin_ref[...] = jnp.full((1, 1), jnp.min(y), jnp.float32)
    omax_ref[...] = jnp.full((1, 1), jnp.max(y), jnp.float32)


def qconv_pallas(x_nhwc, wq_flat, bias, params, *, tile_h, vmem_limit):
    N, H, W, C = x_nhwc.shape
    KH, KC, O = wq_flat.shape
    KW = KC // C
    assert H % tile_h == 0
    n_ht = H // tile_h
    grid = (N, n_ht)

    cost = pl.CostEstimate(
        flops=2 * N * H * W * C * O * KH * KW,
        transcendentals=0,
        bytes_accessed=(x_nhwc.size * 4 + wq_flat.size * 2 + bias.size * 4
                        + N * H * W * O * 4),
    )

    return pl.pallas_call(
        _qconv_kernel,
        out_shape=(
            jax.ShapeDtypeStruct((N, H, W, O), jnp.float32),
            jax.ShapeDtypeStruct((N, n_ht, 1, 1), jnp.float32),   # per-tile y min
            jax.ShapeDtypeStruct((N, n_ht, 1, 1), jnp.float32),   # per-tile y max
        ),
        grid=grid,
        in_specs=[
            pl.BlockSpec(memory_space=pltpu.MemorySpace.SMEM),          # scalar qparams
            # Full image resident per batch element (re-DMA'd only when n changes).
            pl.BlockSpec((None, H, W, C), lambda n, ht: (n, 0, 0, 0)),
            pl.BlockSpec((KH, KC, O), lambda n, ht: (0, 0, 0)),         # resident bf16 wq
            pl.BlockSpec((1, O), lambda n, ht: (0, 0)),                 # resident bias
        ],
        # NOTE: with toy O (=8) the output last dim is < 128 lanes, so stores are masked;
        # at production channel counts (O >= 128) this same spec is lane-dense.
        out_specs=(
            pl.BlockSpec((None, tile_h, W, O), lambda n, ht: (n, ht, 0, 0)),
            pl.BlockSpec((None, None, 1, 1), lambda n, ht: (n, ht, 0, 0)),
            pl.BlockSpec((None, None, 1, 1), lambda n, ht: (n, ht, 0, 0)),
        ),
        scratch_shapes=[
            pltpu.VMEM((tile_h + 2, W + 2, C), jnp.bfloat16),   # quantized padded window
        ],
        compiler_params=pltpu.CompilerParams(
            # N leads and is the only parallel axis: megacore (v7x) shards over images,
            # never duplicating the resident image across TensorCores.
            dimension_semantics=("parallel", "arbitrary"),
            vmem_limit_bytes=vmem_limit,
        ),
        cost_estimate=cost,
    )(params, x_nhwc, wq_flat, bias.reshape(1, O).astype(jnp.float32))


# ----------------------------------------------------------------------------
# Tiled elementwise fake-quant kernel for the conv output.
# ----------------------------------------------------------------------------
def _fake_quant_kernel(params_ref, y_ref, o_ref):
    # params_ref: SMEM f32[3] = [inv_so, so, zpo]
    inv_s = params_ref[0]
    s = params_ref[1]
    zp = params_ref[2]
    q = jnp.clip(jnp.round(y_ref[...] * inv_s + zp), QMIN, QMAX)
    o_ref[...] = (q - zp) * s


def fake_quant_pallas(y_nhwc, fq_params, *, vmem_limit):
    """Elementwise fake-quant over a metadata-only (N*H, W*O) view (no pad/ravel copy)."""
    N, H, W, O = y_nhwc.shape
    rows, cols = N * H, W * O
    y2 = y_nhwc.reshape(rows, cols)          # contiguous NHWC -> free reshape

    budget = max(vmem_limit // 2, 4 * 1024 * 1024)
    cands = _divisor_tiles(rows)
    tile_m = cands[-1]
    for d in cands:                           # largest row tile that fits the budget
        if d * cols * 4 * 4 <= budget:        # in + out, double-buffered
            tile_m = d
            break

    out = pl.pallas_call(
        _fake_quant_kernel,
        out_shape=jax.ShapeDtypeStruct((rows, cols), jnp.float32),
        grid=(rows // tile_m,),
        in_specs=[
            pl.BlockSpec(memory_space=pltpu.MemorySpace.SMEM),
            pl.BlockSpec((tile_m, cols), lambda i: (i, 0)),
        ],
        out_specs=pl.BlockSpec((tile_m, cols), lambda i: (i, 0)),
        compiler_params=pltpu.CompilerParams(
            dimension_semantics=("parallel",),
            vmem_limit_bytes=vmem_limit,
        ),
    )(fq_params, y2)
    return out.reshape(N, H, W, O)


# ----------------------------------------------------------------------------
# Full QConv2d forward (training-mode semantics).
# ----------------------------------------------------------------------------
def _qparams_from_minmax(rmin, rmax):
    scale = (rmax - rmin) / (QMAX - QMIN)
    # Guard the degenerate constant-tensor case (the PyTorch module would give inf/nan).
    scale = jnp.where(scale > 0, scale, jnp.float32(1.0))
    zero_point = QMIN - rmin / scale
    return scale.astype(jnp.float32), zero_point.astype(jnp.float32)


def _qparams(t):
    return _qparams_from_minmax(jnp.min(t), jnp.max(t))


def _pick_tile_h(H, W, C, O, KH, KW, vmem_limit):
    """Largest (8-aligned) row tile whose working set fits the VMEM budget."""
    fixed = 2 * H * W * C * 4 + 2 * KH * KW * C * O * 2   # resident image (2x) + weight
    budget = int(vmem_limit * 0.6) - fixed
    cands = _divisor_tiles(H)
    for th in cands:
        per_tile = (th + 2) * (W + 2) * C * 2 + 2 * th * W * O * 4
        if per_tile <= budget:
            return th
    return cands[-1]


@jax.jit
def qconv2d_forward(x_nchw, weight_oihw, bias):
    N, C, H, W = x_nchw.shape
    O, CI, KH, KW = weight_oihw.shape
    assert (KH, KW) == (3, 3) and CI == C, "module uses a 3x3 / stride-1 / pad-1 conv"

    si, zpi = _qparams(x_nchw)
    sw, zpw = _qparams(weight_oihw)
    conv_params = jnp.stack([1.0 / si, zpi, 1.0 / (si * sw)]).astype(jnp.float32)

    # layout glue: NCHW -> NHWC, OIHW -> HWIO (channels on the lane axis)
    x_nhwc = jnp.transpose(x_nchw, (0, 2, 3, 1)).astype(jnp.float32)
    w_hwio = jnp.transpose(weight_oihw, (2, 3, 1, 0)).astype(jnp.float32)

    # Quantize the weight ONCE here (0..255 is exact in bf16) and fold (KW, C) into the
    # contraction axis: (KH, KW*C, O).
    wq = jnp.clip(jnp.round(w_hwio * (1.0 / sw) + zpw), QMIN, QMAX)
    wq_flat = wq.reshape(KH, KW * C, O).astype(jnp.bfloat16)

    tile_h = _pick_tile_h(H, W, C, O, KH, KW, _VMEM_LIMIT)
    y_nhwc, y_tmin, y_tmax = qconv_pallas(
        x_nhwc, wq_flat, bias.astype(jnp.float32), conv_params,
        tile_h=tile_h, vmem_limit=_VMEM_LIMIT)

    # Output qparams from the per-tile min/max the conv kernel already produced
    # (no extra full HBM read of y).
    so, zpo = _qparams_from_minmax(jnp.min(y_tmin), jnp.max(y_tmax))
    fq_params = jnp.stack([1.0 / so, so, zpo]).astype(jnp.float32)
    out_nhwc = fake_quant_pallas(y_nhwc, fq_params, vmem_limit=_VMEM_LIMIT)

    # TODO(synk): callers that accept NHWC should consume out_nhwc directly and skip
    # this final full-tensor transpose pass.
    out_nchw = jnp.transpose(out_nhwc, (0, 3, 1, 2))
    return out_nchw, y_nhwc, (si, sw)


def _reference_forward(x_nchw, weight_oihw, bias):
    """Pure-JAX reference of the full forward (same reciprocal-multiply formulation)."""
    si, zpi = _qparams(x_nchw)
    sw, zpw = _qparams(weight_oihw)
    xq = jnp.clip(jnp.round(x_nchw * (1.0 / si) + zpi), QMIN, QMAX)
    wq = jnp.clip(jnp.round(weight_oihw * (1.0 / sw) + zpw), QMIN, QMAX)
    y = lax.conv_general_dilated(
        xq, wq, window_strides=(1, 1), padding=((1, 1), (1, 1)),
        dimension_numbers=("NCHW", "OIHW", "NCHW"))
    y = (y + bias[None, :, None, None]) * (1.0 / (si * sw))
    so, zpo = _qparams(y)
    q = jnp.clip(jnp.round(y * (1.0 / so) + zpo), QMIN, QMAX)
    return (q - zpo) * so, y


if __name__ == "__main__":
    # deterministic setup: batch=2, in_ch=4, out_ch=8, 16x16 spatial, 3x3 conv
    key = jax.random.PRNGKey(0)
    k_x, k_w, k_b = jax.random.split(key, 3)
    x = jax.random.normal(k_x, (2, 4, 16, 16), dtype=jnp.float32)
    weight = 0.1 * jax.random.normal(k_w, (8, 4, 3, 3), dtype=jnp.float32)
    bias = 0.1 * jax.random.normal(k_b, (8,), dtype=jnp.float32)

    out, y_pre_fq_nhwc, _ = qconv2d_forward(x, weight, bias)
    out = jax.block_until_ready(out)

    out_ref, y_ref = _reference_forward(x, weight, bias)
    out_ref = jax.block_until_ready(out_ref)

    y_np = np.asarray(jnp.transpose(y_pre_fq_nhwc, (0, 3, 1, 2)))
    y_ref_np = np.asarray(y_ref)
    out_np, out_ref_np = np.asarray(out), np.asarray(out_ref)

    assert out.shape == (2, 8, 16, 16)
    tol_y = 1e-3 * float(np.max(np.abs(y_ref_np)))
    assert np.allclose(y_np, y_ref_np, rtol=1e-3, atol=tol_y), \
        float(np.max(np.abs(y_np - y_ref_np)))
    tol_o = 1e-3 * float(np.max(np.abs(out_ref_np)))
    assert np.allclose(out_np, out_ref_np, rtol=1e-3, atol=tol_o), \
        float(np.max(np.abs(out_np - out_ref_np)))

    print("KERNEL_OK")
</pallas_src>

<mosaic_0001>
module attributes {stable_mosaic.version = 11 : i64} {
  func.func @_qconv_kernel(%arg0: i32, %arg1: i32, %arg2: memref<3xf32, #tpu.memory_space<smem>>, %arg3: memref<1x16x16x4xf32, #tpu.memory_space<vmem>>, %arg4: memref<3x12x8xbf16, #tpu.memory_space<vmem>>, %arg5: memref<1x8xf32, #tpu.memory_space<vmem>>, %arg6: memref<1x16x16x8xf32, #tpu.memory_space<vmem>>, %arg7: memref<1x1x1x1xf32, #tpu.memory_space<vmem>>, %arg8: memref<1x1x1x1xf32, #tpu.memory_space<vmem>>, %arg9: memref<18x18x4xbf16, #tpu.memory_space<vmem>>) attributes {dimension_semantics = [#tpu.dimension_semantics<parallel>, #tpu.dimension_semantics<arbitrary>], iteration_bounds = array<i64: 2, 1>, scalar_prefetch = 0 : i64, scratch_operands = 1 : i64, tpu.core_type = #tpu.core_type<tc>, window_params = [{transform_indices = @transform_0, window_bounds = array<i64: 3>}, {transform_indices = @transform_1, window_bounds = array<i64: 1, 16, 16, 4>}, {pipeline_mode = #tpu.pipeline_mode<synchronous>, transform_indices = @transform_2, window_bounds = array<i64: 3, 12, 8>}, {pipeline_mode = #tpu.pipeline_mode<synchronous>, transform_indices = @transform_3, window_bounds = array<i64: 1, 8>}, {transform_indices = @transform_4, window_bounds = array<i64: 1, 16, 16, 8>}, {transform_indices = @transform_5, window_bounds = array<i64: 1, 1, 1, 1>}, {transform_indices = @transform_6, window_bounds = array<i64: 1, 1, 1, 1>}]} {
    %c0 = arith.constant 0 : index
    %0 = memref.load %arg2[%c0] : memref<3xf32, #tpu.memory_space<smem>>
    %c1 = arith.constant 1 : index
    %1 = memref.load %arg2[%c1] : memref<3xf32, #tpu.memory_space<smem>>
    %c2 = arith.constant 2 : index
    %2 = memref.load %arg2[%c2] : memref<3xf32, #tpu.memory_space<smem>>
    %c16_i32 = arith.constant 16 : i32
    %3 = arith.muli %arg1, %c16_i32 : i32
    %4 = tpu.assume_multiple %3, 16 : i32
    %cst = arith.constant 0.000000e+00 : bf16
    %5 = vector.broadcast %cst : bf16 to vector<18x1x4xbf16>
    %c0_0 = arith.constant 0 : index
    %c0_1 = arith.constant 0 : index
    %c0_2 = arith.constant 0 : index
    %6 = vector.load %arg9[%c0_0, %c0_1, %c0_2] : memref<18x18x4xbf16, #tpu.memory_space<vmem>>, vector<18x1x4xbf16>
    tpu.vector_store %arg9[%c0_0, %c0_1, %c0_2], %5 {strides = array<i32>} : memref<18x18x4xbf16, #tpu.memory_space<vmem>>, vector<18x1x4xbf16>,
    %c0_3 = arith.constant 0 : index
    %c17 = arith.constant 17 : index
    %c0_4 = arith.constant 0 : index
    %7 = vector.load %arg9[%c0_3, %c17, %c0_4] : memref<18x18x4xbf16, #tpu.memory_space<vmem>>, vector<18x1x4xbf16>
    tpu.vector_store %arg9[%c0_3, %c17, %c0_4], %5 {strides = array<i32>} : memref<18x18x4xbf16, #tpu.memory_space<vmem>>, vector<18x1x4xbf16>,
    %c0_5 = arith.constant 0 : index
    %8 = arith.index_cast %4 : i32 to index
    %c0_6 = arith.constant 0 : index
    %c0_7 = arith.constant 0 : index
    %9 = vector.load %arg3[%c0_5, %8, %c0_6, %c0_7] : memref<1x16x16x4xf32, #tpu.memory_space<vmem>>, vector<1x16x16x4xf32>
    %10 = vector.shape_cast %9 : vector<1x16x16x4xf32> to vector<16x16x4xf32>
    %11 = vector.broadcast %0 : f32 to vector<16x16x4xf32>
    %12 = arith.mulf %10, %11 : vector<16x16x4xf32>
    %13 = vector.broadcast %1 : f32 to vector<16x16x4xf32>
    %14 = arith.addf %12, %13 : vector<16x16x4xf32>
    %15 = math.roundeven %14 : vector<16x16x4xf32>
    %cst_8 = arith.constant 0.000000e+00 : f32
    %cst_9 = arith.constant 2.550000e+02 : f32
    %16 = vector.broadcast %cst_8 : f32 to vector<16x16x4xf32>
    %17 = arith.maximumf %16, %15 : vector<16x16x4xf32>
    %18 = vector.broadcast %cst_9 : f32 to vector<16x16x4xf32>
    %19 = arith.minimumf %18, %17 : vector<16x16x4xf32>
    %20 = arith.truncf %19 : vector<16x16x4xf32> to vector<16x16x4xbf16>
    %c1_10 = arith.constant 1 : index
    %c1_11 = arith.constant 1 : index
    %c0_12 = arith.constant 0 : index
    %21 = vector.load %arg9[%c1_10, %c1_11, %c0_12] : memref<18x18x4xbf16, #tpu.memory_space<vmem>>, vector<16x16x4xbf16>
    tpu.vector_store %arg9[%c1_10, %c1_11, %c0_12], %20 {strides = array<i32>} : memref<18x18x4xbf16, #tpu.memory_space<vmem>>, vector<16x16x4xbf16>,
    %c0_i32 = arith.constant 0 : i32
    %22 = arith.cmpi sgt, %arg1, %c0_i32 : i32
    %23 = arith.extui %22 : i1 to i32
    %c0_i32_13 = arith.constant 0 : i32
    %24 = arith.cmpi ne, %23, %c0_i32_13 : i32
    scf.if %24 {
      %c1_i32 = arith.constant 1 : i32
      %78 = arith.subi %4, %c1_i32 : i32
      %c0_51 = arith.constant 0 : index
      %79 = arith.index_cast %78 : i32 to index
      %c0_52 = arith.constant 0 : index
      %c0_53 = arith.constant 0 : index
      %80 = vector.load %arg3[%c0_51, %79, %c0_52, %c0_53] : memref<1x16x16x4xf32, #tpu.memory_space<vmem>>, vector<1x1x16x4xf32>
      %81 = vector.shape_cast %80 : vector<1x1x16x4xf32> to vector<1x16x4xf32>
      %82 = vector.broadcast %0 : f32 to vector<1x16x4xf32>
      %83 = arith.mulf %81, %82 : vector<1x16x4xf32>
      %84 = vector.broadcast %1 : f32 to vector<1x16x4xf32>
      %85 = arith.addf %83, %84 : vector<1x16x4xf32>
      %86 = math.roundeven %85 : vector<1x16x4xf32>
      %cst_54 = arith.constant 0.000000e+00 : f32
      %cst_55 = arith.constant 2.550000e+02 : f32
      %87 = vector.broadcast %cst_54 : f32 to vector<1x16x4xf32>
      %88 = arith.maximumf %87, %86 : vector<1x16x4xf32>
      %89 = vector.broadcast %cst_55 : f32 to vector<1x16x4xf32>
      %90 = arith.minimumf %89, %88 : vector<1x16x4xf32>
      %91 = arith.truncf %90 : vector<1x16x4xf32> to vector<1x16x4xbf16>
      %c0_56 = arith.constant 0 : index
      %c1_57 = arith.constant 1 : index
      %c0_58 = arith.constant 0 : index
      %92 = vector.load %arg9[%c0_56, %c1_57, %c0_58] : memref<18x18x4xbf16, #tpu.memory_space<vmem>>, vector<1x16x4xbf16>
      tpu.vector_store %arg9[%c0_56, %c1_57, %c0_58], %91 {strides = array<i32>} : memref<18x18x4xbf16, #tpu.memory_space<vmem>>, vector<1x16x4xbf16>,
    } else {
    }
    %c0_i32_14 = arith.constant 0 : i32
    %25 = arith.cmpi eq, %arg1, %c0_i32_14 : i32
    %26 = arith.extui %25 : i1 to i32
    %c0_i32_15 = arith.constant 0 : i32
    %27 = arith.cmpi ne, %26, %c0_i32_15 : i32
    scf.if %27 {
      %cst_51 = arith.constant 0.000000e+00 : bf16
      %78 = vector.broadcast %cst_51 : bf16 to vector<1x16x4xbf16>
      %c0_52 = arith.constant 0 : index
      %c1_53 = arith.constant 1 : index
      %c0_54 = arith.constant 0 : index
      %79 = vector.load %arg9[%c0_52, %c1_53, %c0_54] : memref<18x18x4xbf16, #tpu.memory_space<vmem>>, vector<1x16x4xbf16>
      tpu.vector_store %arg9[%c0_52, %c1_53, %c0_54], %78 {strides = array<i32>} : memref<18x18x4xbf16, #tpu.memory_space<vmem>>, vector<1x16x4xbf16>,
    } else {
    }
    %c0_i32_16 = arith.constant 0 : i32
    %28 = arith.cmpi slt, %arg1, %c0_i32_16 : i32
    %29 = arith.extui %28 : i1 to i32
    %c0_i32_17 = arith.constant 0 : i32
    %30 = arith.cmpi ne, %29, %c0_i32_17 : i32
    scf.if %30 {
      %c16_i32_51 = arith.constant 16 : i32
      %78 = arith.addi %4, %c16_i32_51 : i32
      %c0_52 = arith.constant 0 : index
      %79 = arith.index_cast %78 : i32 to index
      %c0_53 = arith.constant 0 : index
      %c0_54 = arith.constant 0 : index
      %80 = vector.load %arg3[%c0_52, %79, %c0_53, %c0_54] : memref<1x16x16x4xf32, #tpu.memory_space<vmem>>, vector<1x1x16x4xf32>
      %81 = vector.shape_cast %80 : vector<1x1x16x4xf32> to vector<1x16x4xf32>
      %82 = vector.broadcast %0 : f32 to vector<1x16x4xf32>
      %83 = arith.mulf %81, %82 : vector<1x16x4xf32>
      %84 = vector.broadcast %1 : f32 to vector<1x16x4xf32>
      %85 = arith.addf %83, %84 : vector<1x16x4xf32>
      %86 = math.roundeven %85 : vector<1x16x4xf32>
      %cst_55 = arith.constant 0.000000e+00 : f32
      %cst_56 = arith.constant 2.550000e+02 : f32
      %87 = vector.broadcast %cst_55 : f32 to vector<1x16x4xf32>
      %88 = arith.maximumf %87, %86 : vector<1x16x4xf32>
      %89 = vector.broadcast %cst_56 : f32 to vector<1x16x4xf32>
      %90 = arith.minimumf %89, %88 : vector<1x16x4xf32>
      %91 = arith.truncf %90 : vector<1x16x4xf32> to vector<1x16x4xbf16>
      %c17_57 = arith.constant 17 : index
      %c1_58 = arith.constant 1 : index
      %c0_59 = arith.constant 0 : index
      %92 = vector.load %arg9[%c17_57, %c1_58, %c0_59] : memref<18x18x4xbf16, #tpu.memory_space<vmem>>, vector<1x16x4xbf16>
      tpu.vector_store %arg9[%c17_57, %c1_58, %c0_59], %91 {strides = array<i32>} : memref<18x18x4xbf16, #tpu.memory_space<vmem>>, vector<1x16x4xbf16>,
    } else {
    }
    %c0_i32_18 = arith.constant 0 : i32
    %31 = arith.cmpi eq, %arg1, %c0_i32_18 : i32
    %32 = arith.extui %31 : i1 to i32
    %c0_i32_19 = arith.constant 0 : i32
    %33 = arith.cmpi ne, %32, %c0_i32_19 : i32
    scf.if %33 {
      %cst_51 = arith.constant 0.000000e+00 : bf16
      %78 = vector.broadcast %cst_51 : bf16 to vector<1x16x4xbf16>
      %c17_52 = arith.constant 17 : index
      %c1_53 = arith.constant 1 : index
      %c0_54 = arith.constant 0 : index
      %79 = vector.load %arg9[%c17_52, %c1_53, %c0_54] : memref<18x18x4xbf16, #tpu.memory_space<vmem>>, vector<1x16x4xbf16>
      tpu.vector_store %arg9[%c17_52, %c1_53, %c0_54], %78 {strides = array<i32>} : memref<18x18x4xbf16, #tpu.memory_space<vmem>>, vector<1x16x4xbf16>,
    } else {
    }
    %c0_20 = arith.constant 0 : index
    %c0_21 = arith.constant 0 : index
    %c0_22 = arith.constant 0 : index
    %34 = vector.load %arg9[%c0_20, %c0_21, %c0_22] : memref<18x18x4xbf16, #tpu.memory_space<vmem>>, vector<18x16x4xbf16>
    %c0_23 = arith.constant 0 : index
    %c1_24 = arith.constant 1 : index
    %c0_25 = arith.constant 0 : index
    %35 = vector.load %arg9[%c0_23, %c1_24, %c0_25] : memref<18x18x4xbf16, #tpu.memory_space<vmem>>, vector<18x16x4xbf16>
    %c0_26 = arith.constant 0 : index
    %c2_27 = arith.constant 2 : index
    %c0_28 = arith.constant 0 : index
    %36 = vector.load %arg9[%c0_26, %c2_27, %c0_28] : memref<18x18x4xbf16, #tpu.memory_space<vmem>>, vector<18x16x4xbf16>
    %37 = tpu.concatenate %34, %35, %36 in 2 : vector<18x16x4xbf16>, vector<18x16x4xbf16>, vector<18x16x4xbf16> -> vector<18x16x12xbf16>
    %c0_29 = arith.constant 0 : index
    %c0_30 = arith.constant 0 : index
    %c0_31 = arith.constant 0 : index
    %38 = vector.load %arg4[%c0_29, %c0_30, %c0_31] : memref<3x12x8xbf16, #tpu.memory_space<vmem>>, vector<3x12x8xbf16>
    %39 = vector.extract_strided_slice %37 {offsets = [0, 0, 0], sizes = [16, 16, 12], strides = [1, 1, 1]} : vector<18x16x12xbf16> to vector<16x16x12xbf16>
    %40 = vector.extract_strided_slice %38 {offsets = [0, 0, 0], sizes = [1, 12, 8], strides = [1, 1, 1]} : vector<3x12x8xbf16> to vector<1x12x8xbf16>
    %41 = vector.shape_cast %40 : vector<1x12x8xbf16> to vector<12x8xbf16>
    %cst_32 = arith.constant dense<0.000000e+00> : vector<16x16x8xf32>
    %42 = tpu.matmul %39, %41, %cst_32 {dimension_numbers = #tpu.dot_dimension_numbers<[2], [0], [0, 1], [1], [0, 0, 0, 1, 1, 1], [], []>} : vector<16x16x12xbf16>, vector<12x8xbf16>, vector<16x16x8xf32> -> vector<16x16x8xf32>
    %43 = vector.extract_strided_slice %37 {offsets = [1, 0, 0], sizes = [16, 16, 12], strides = [1, 1, 1]} : vector<18x16x12xbf16> to vector<16x16x12xbf16>
    %44 = vector.extract_strided_slice %38 {offsets = [1, 0, 0], sizes = [1, 12, 8], strides = [1, 1, 1]} : vector<3x12x8xbf16> to vector<1x12x8xbf16>
    %45 = vector.shape_cast %44 : vector<1x12x8xbf16> to vector<12x8xbf16>
    %cst_33 = arith.constant dense<0.000000e+00> : vector<16x16x8xf32>
    %46 = tpu.matmul %43, %45, %cst_33 {dimension_numbers = #tpu.dot_dimension_numbers<[2], [0], [0, 1], [1], [0, 0, 0, 1, 1, 1], [], []>} : vector<16x16x12xbf16>, vector<12x8xbf16>, vector<16x16x8xf32> -> vector<16x16x8xf32>
    %47 = arith.addf %42, %46 : vector<16x16x8xf32>
    %48 = vector.extract_strided_slice %37 {offsets = [2, 0, 0], sizes = [16, 16, 12], strides = [1, 1, 1]} : vector<18x16x12xbf16> to vector<16x16x12xbf16>
    %49 = vector.extract_strided_slice %38 {offsets = [2, 0, 0], sizes = [1, 12, 8], strides = [1, 1, 1]} : vector<3x12x8xbf16> to vector<1x12x8xbf16>
    %50 = vector.shape_cast %49 : vector<1x12x8xbf16> to vector<12x8xbf16>
    %cst_34 = arith.constant dense<0.000000e+00> : vector<16x16x8xf32>
    %51 = tpu.matmul %48, %50, %cst_34 {dimension_numbers = #tpu.dot_dimension_numbers<[2], [0], [0, 1], [1], [0, 0, 0, 1, 1, 1], [], []>} : vector<16x16x12xbf16>, vector<12x8xbf16>, vector<16x16x8xf32> -> vector<16x16x8xf32>
    %52 = arith.addf %47, %51 : vector<16x16x8xf32>
    %c0_35 = arith.constant 0 : index
    %c0_36 = arith.constant 0 : index
    %53 = vector.load %arg5[%c0_35, %c0_36] : memref<1x8xf32, #tpu.memory_space<vmem>>, vector<1x8xf32>
    %54 = vector.shape_cast %53 : vector<1x8xf32> to vector<1x1x8xf32>
    %55 = vector.broadcast %54 : vector<1x1x8xf32> to vector<16x16x8xf32>
    %56 = arith.addf %52, %55 : vector<16x16x8xf32>
    %57 = vector.broadcast %2 : f32 to vector<16x16x8xf32>
    %58 = arith.mulf %56, %57 : vector<16x16x8xf32>
    %c0_37 = arith.constant 0 : index
    %c0_38 = arith.constant 0 : index
    %c0_39 = arith.constant 0 : index
    %c0_40 = arith.constant 0 : index
    %59 = vector.load %arg6[%c0_37, %c0_38, %c0_39, %c0_40] : memref<1x16x16x8xf32, #tpu.memory_space<vmem>>, vector<1x16x16x8xf32>
    %60 = vector.shape_cast %59 : vector<1x16x16x8xf32> to vector<16x16x8xf32>
    %61 = vector.shape_cast %58 : vector<16x16x8xf32> to vector<1x16x16x8xf32>
    tpu.vector_store %arg6[%c0_37, %c0_38, %c0_39, %c0_40], %61 {strides = array<i32>} : memref<1x16x16x8xf32, #tpu.memory_space<vmem>>, vector<1x16x16x8xf32>,
    %62 = vector.shape_cast %58 : vector<16x16x8xf32> to vector<1x16x16x8xf32>
    %cst_41 = arith.constant dense<0x7F800000> : vector<1xf32>
    %63 = vector.multi_reduction <minimumf>, %62, %cst_41 [1, 2, 3] : vector<1x16x16x8xf32> to vector<1xf32>
    %64 = vector.shape_cast %63 : vector<1xf32> to vector<1x1x1x1xf32>
    %65 = vector.extract %64[0, 0, 0, 0] : f32 from vector<1x1x1x1xf32>
    %66 = vector.broadcast %65 : f32 to vector<1x1xf32>
    %c0_42 = arith.constant 0 : index
    %c0_43 = arith.constant 0 : index
    %c0_44 = arith.constant 0 : index
    %c0_45 = arith.constant 0 : index
    %67 = vector.load %arg7[%c0_42, %c0_43, %c0_44, %c0_45] : memref<1x1x1x1xf32, #tpu.memory_space<vmem>>, vector<1x1x1x1xf32>
    %68 = vector.shape_cast %67 : vector<1x1x1x1xf32> to vector<1x1xf32>
    %69 = vector.shape_cast %66 : vector<1x1xf32> to vector<1x1x1x1xf32>
    tpu.vector_store %arg7[%c0_42, %c0_43, %c0_44, %c0_45], %69 {strides = array<i32>} : memref<1x1x1x1xf32, #tpu.memory_space<vmem>>, vector<1x1x1x1xf32>,
    %70 = vector.shape_cast %58 : vector<16x16x8xf32> to vector<1x16x16x8xf32>
    %cst_46 = arith.constant dense<0xFF800000> : vector<1xf32>
    %71 = vector.multi_reduction <maximumf>, %70, %cst_46 [1, 2, 3] : vector<1x16x16x8xf32> to vector<1xf32>
    %72 = vector.shape_cast %71 : vector<1xf32> to vector<1x1x1x1xf32>
    %73 = vector.extract %72[0, 0, 0, 0] : f32 from vector<1x1x1x1xf32>
    %74 = vector.broadcast %73 : f32 to vector<1x1xf32>
    %c0_47 = arith.constant 0 : index
    %c0_48 = arith.constant 0 : index
    %c0_49 = arith.constant 0 : index
    %c0_50 = arith.constant 0 : index
    %75 = vector.load %arg8[%c0_47, %c0_48, %c0_49, %c0_50] : memref<1x1x1x1xf32, #tpu.memory_space<vmem>>, vector<1x1x1x1xf32>
    %76 = vector.shape_cast %75 : vector<1x1x1x1xf32> to vector<1x1xf32>
    %77 = vector.shape_cast %74 : vector<1x1xf32> to vector<1x1x1x1xf32>
    tpu.vector_store %arg8[%c0_47, %c0_48, %c0_49, %c0_50], %77 {strides = array<i32>} : memref<1x1x1x1xf32, #tpu.memory_space<vmem>>, vector<1x1x1x1xf32>,
    return
  }
  func.func @transform_0(%arg0: i32, %arg1: i32) -> i32 {
    %c0_i32 = arith.constant 0 : i32
    %c0_i32_0 = arith.constant 0 : i32
    return %c0_i32 : i32
  }
  func.func @transform_1(%arg0: i32, %arg1: i32) -> (i32, i32, i32, i32) {
    %c0_i32 = arith.constant 0 : i32
    %c0_i32_0 = arith.constant 0 : i32
    %c0_i32_1 = arith.constant 0 : i32
    %c0_i32_2 = arith.constant 0 : i32
    return %arg0, %c0_i32, %c0_i32_0, %c0_i32_1 : i32, i32, i32, i32
  }
  func.func @transform_2(%arg0: i32, %arg1: i32) -> (i32, i32, i32) {
    %c0_i32 = arith.constant 0 : i32
    %c0_i32_0 = arith.constant 0 : i32
    %c0_i32_1 = arith.constant 0 : i32
    %c0_i32_2 = arith.constant 0 : i32
    return %c0_i32, %c0_i32_0, %c0_i32_1 : i32, i32, i32
  }
  func.func @transform_3(%arg0: i32, %arg1: i32) -> (i32, i32) {
    %c0_i32 = arith.constant 0 : i32
    %c0_i32_0 = arith.constant 0 : i32
    %c0_i32_1 = arith.constant 0 : i32
    return %c0_i32, %c0_i32_0 : i32, i32
  }
  func.func @transform_4(%arg0: i32, %arg1: i32) -> (i32, i32, i32, i32) {
    %c0_i32 = arith.constant 0 : i32
    %c0_i32_0 = arith.constant 0 : i32
    %c0_i32_1 = arith.constant 0 : i32
    return %arg0, %arg1, %c0_i32, %c0_i32_0 : i32, i32, i32, i32
  }
  func.func @transform_5(%arg0: i32, %arg1: i32) -> (i32, i32, i32, i32) {
    %c0_i32 = arith.constant 0 : i32
    %c0_i32_0 = arith.constant 0 : i32
    %c0_i32_1 = arith.constant 0 : i32
    return %arg0, %arg1, %c0_i32, %c0_i32_0 : i32, i32, i32, i32
  }
  func.func @transform_6(%arg0: i32, %arg1: i32) -> (i32, i32, i32, i32) {
    %c0_i32 = arith.constant 0 : i32
    %c0_i32_0 = arith.constant 0 : i32
    %c0_i32_1 = arith.constant 0 : i32
    return %arg0, %arg1, %c0_i32, %c0_i32_0 : i32, i32, i32, i32
  }
}

module attributes {stable_mosaic.version = 11 : i64} {
  func.func @_fake_quant_kernel(%arg0: i32, %arg1: memref<3xf32, #tpu.memory_space<smem>>, %arg2: memref<32x128xf32, #tpu.memory_space<vmem>>, %arg3: memref<32x128xf32, #tpu.memory_space<vmem>>) attributes {dimension_semantics = [#tpu.dimension_semantics<parallel>], iteration_bounds = array<i64: 1>, scalar_prefetch = 0 : i64, scratch_operands = 0 : i64, tpu.core_type = #tpu.core_type<tc>, window_params = [{transform_indices = @transform_0, window_bounds = array<i64: 3>}, {transform_indices = @transform_1, window_bounds = array<i64: 32, 128>}, {transform_indices = @transform_2, window_bounds = array<i64: 32, 128>}]} {
    %c0 = arith.constant 0 : index
    %0 = memref.load %arg1[%c0] : memref<3xf32, #tpu.memory_space<smem>>
    %c1 = arith.constant 1 : index
    %1 = memref.load %arg1[%c1] : memref<3xf32, #tpu.memory_space<smem>>
    %c2 = arith.constant 2 : index
    %2 = memref.load %arg1[%c2] : memref<3xf32, #tpu.memory_space<smem>>
    %c0_0 = arith.constant 0 : index
    %c0_1 = arith.constant 0 : index
    %3 = vector.load %arg2[%c0_0, %c0_1] : memref<32x128xf32, #tpu.memory_space<vmem>>, vector<32x128xf32>
    %4 = vector.broadcast %0 : f32 to vector<32x128xf32>
    %5 = arith.mulf %3, %4 : vector<32x128xf32>
    %6 = vector.broadcast %2 : f32 to vector<32x128xf32>
    %7 = arith.addf %5, %6 : vector<32x128xf32>
    %8 = math.roundeven %7 : vector<32x128xf32>
    %cst = arith.constant 0.000000e+00 : f32
    %cst_2 = arith.constant 2.550000e+02 : f32
    %9 = vector.broadcast %cst : f32 to vector<32x128xf32>
    %10 = arith.maximumf %9, %8 : vector<32x128xf32>
    %11 = vector.broadcast %cst_2 : f32 to vector<32x128xf32>
    %12 = arith.minimumf %11, %10 : vector<32x128xf32>
    %13 = vector.broadcast %2 : f32 to vector<32x128xf32>
    %14 = arith.subf %12, %13 : vector<32x128xf32>
    %15 = vector.broadcast %1 : f32 to vector<32x128xf32>
    %16 = arith.mulf %14, %15 : vector<32x128xf32>
    %c0_3 = arith.constant 0 : index
    %c0_4 = arith.constant 0 : index
    %17 = vector.load %arg3[%c0_3, %c0_4] : memref<32x128xf32, #tpu.memory_space<vmem>>, vector<32x128xf32>
    tpu.vector_store %arg3[%c0_3, %c0_4], %16 {strides = array<i32>} : memref<32x128xf32, #tpu.memory_space<vmem>>, vector<32x128xf32>,
    return
  }
  func.func @transform_0(%arg0: i32) -> i32 {
    %c0_i32 = arith.constant 0 : i32
    %c0_i32_0 = arith.constant 0 : i32
    return %c0_i32 : i32
  }
  func.func @transform_1(%arg0: i32) -> (i32, i32) {
    %c0_i32 = arith.constant 0 : i32
    %c0_i32_0 = arith.constant 0 : i32
    return %arg0, %c0_i32 : i32, i32
  }
  func.func @transform_2(%arg0: i32) -> (i32, i32) {
    %c0_i32 = arith.constant 0 : i32
    %c0_i32_0 = arith.constant 0 : i32
    return %arg0, %c0_i32 : i32, i32
  }
}

</mosaic_0001>

<bundles_post_ra>
// kernel: qconv2d_forward.3
= control target key start
LH: loop header
LB: loop body
LE: loop exit
PB: predicated region body
PF: predicated region fallthrough
CT: control target
= control target key end

     0   :  { %7 = vsyncpa [#allocation3], 0  ;;  %s135_s0 = inlined_call_operand.vmem [shape: f32[3], index: 0, kind: input, shape index: {}]   ;;  %s136_s1 = inlined_call_operand.vmem [shape: f32[32,128], index: 1, kind: input, shape index: {}]   ;;  %s137_s2 = inlined_call_operand.vmem [shape: f32[32,128], index: 2, kind: output, shape index: {}]  }
   0x1   :  { %s14_s11 = sshll.u32 %s135_s0, 4  ;;  %s15_s11 = int_to_ptr.vmem [resolvable:$true] %s14_s11 }
   0x2   :  { %s78_s12 = scalar_lea.vmem %s15_s11, 16  ;;  %p83_p1 = scmp.lt.s32.totalorder %s15_s11, %s15_s11 }
   0x3   :  { %p79_p0 = scmp.ne.s32.totalorder %s15_s11, %s78_s12  ;;  %p84_p2 = scmp.lt.s32.totalorder %s78_s12, %s78_s12 }
   0x5   :  { %p85_p3 = por %p84_p2, %p83_p1 }
   0x7   :  { %p86_p4 = pnand %p85_p3, %p79_p0 }
   0x9   :  { %89 = shalt.err (!%p86_p4)
}
   0xa   :  { %s92_s13 = smov [#allocation2]  }
   0xb   :  { %17 = dma.vmem_to_smem %s15_s11, 16, %s92_s13, [#allocation3]  }
   0xc   :  { %90 = dma.done.wait [#allocation3], 16  }
   0xd   :  { %91 = vsyncadd [#allocation3], 4294967280 }
   0xe   :  { %23 = sfence }
   0xf   :  { %s24_s14 = sld [smem:[#allocation2]]  ;;  %s72_s15 = sld [smem:[#allocation2 + $0x2]]  ;;  %v27_v0 = vld [vmem:[%s136_s1] sm:$0xff]  ;;  %v28_v1 = vld [vmem:[%s136_s1 + $0x8] sm:$0xff]  ;;  %v29_v2 = vld [vmem:[%s136_s1 + $0x10] sm:$0xff] }
  0x10   :  { %v30_v3 = vld [vmem:[%s136_s1 + $0x18] sm:$0xff]  ;;  %s71_s23 = sld [smem:[#allocation2 + $0x1]] }
  0x15   :  { %v31_v4 = vstv %s24_s14  ;;  %v36_v6 = vstv %s72_s15 }
  0x16   :  { %v32_v5 = vmul.f32 %v31_v4, %v27_v0  ;;  %v33_v7 = vmul.f32 %v31_v4, %v28_v1  ;;  %v34_v8 = vmul.f32 %v31_v4, %v29_v2  ;;  %v35_v9 = vmul.f32 %v31_v4, %v30_v3 }
  0x17   :  { %v57_v25 = vstv %s71_s23 }
  0x18   :  { %v37_v10 = vadd.f32 %v36_v6, %v32_v5  ;;  %v38_v11 = vadd.f32 %v36_v6, %v33_v7  ;;  %v39_v12 = vadd.f32 %v36_v6, %v34_v8  ;;  %v40_v13 = vadd.f32 %v36_v6, %v35_v9 }
  0x1a   :  { %v73_v14 = vround.rtne.f32 %v37_v10  ;;  %v74_v15 = vround.rtne.f32 %v38_v11  ;;  %v75_v16 = vround.rtne.f32 %v39_v12  ;;  %v76_v17 = vround.rtne.f32 %v40_v13 }
  0x1c   :  { %v45_v18 = vmax.f32 %v73_v14, 0.0  ;;  %v46_v19 = vmax.f32 %v74_v15, 0.0  ;;  %v47_v20 = vmax.f32 %v75_v16, 0.0  ;;  %v48_v21 = vmax.f32 %v76_v17, 0.0 }
  0x1e   :  { %v49_v22 = vmin.f32 %v45_v18, 255.0  ;;  %v50_v23 = vmin.f32 %v46_v19, 255.0  ;;  %v51_v24 = vmin.f32 %v47_v20, 255.0  ;;  %v52_v26 = vmin.f32 %v48_v21, 255.0 }
  0x20   :  { %v53_v27 = vsub.f32 %v49_v22, %v36_v6  ;;  %v54_v28 = vsub.f32 %v50_v23, %v36_v6  ;;  %v55_v29 = vsub.f32 %v51_v24, %v36_v6  ;;  %v56_v30 = vsub.f32 %v52_v26, %v36_v6 }
  0x22   :  { %v58_v31 = vmul.f32 %v57_v25, %v53_v27  ;;  %v59_v32 = vmul.f32 %v57_v25, %v54_v28  ;;  %v60_v33 = vmul.f32 %v57_v25, %v55_v29  ;;  %v61_v34 = vmul.f32 %v57_v25, %v56_v30 }
  0x24   :  { %62 = vst [vmem:[%s137_s2] sm:$0xff] %v58_v31  ;;  %63 = vst [vmem:[%s137_s2 + $0x8] sm:$0xff] %v59_v32 }
  0x25   :  { %64 = vst [vmem:[%s137_s2 + $0x10] sm:$0xff] %v60_v33  ;;  %65 = vst [vmem:[%s137_s2 + $0x18] sm:$0xff] %v61_v34 }
  0x26   :  { %70 = vsyncpa [#allocation3], 1 }

// kernel: qconv2d_forward.2
= control target key start
LH: loop header
LB: loop body
LE: loop exit
PB: predicated region body
PF: predicated region fallthrough
CT: control target
= control target key end

     0   :  { %12 = vsyncpa [#allocation4], 0  ;;  %s3627_s21 = smov 0   ;;  %s3629_s22 = smov 0   ;;  %s4646_s0 = inlined_call_operand.vmem [shape: f32[3], index: 0, kind: input, shape index: {}]   ;;  %s4647_s1 = inlined_call_operand.vmem [shape: f32[2,16,16,4], index: 1, kind: input, shape index: {}]   ;;  %s4648_s2 = inlined_call_operand.vmem [shape: bf16[3,12,8], index: 2, kind: input, shape index: {}]   ;;  %s4649_s3 = inlined_call_operand.vmem [shape: f32[1,8], index: 3, kind: input, shape index: {}]   ;;  %s4650_s4 = inlined_call_operand.vmem [shape: f32[2,16,16,8], index: 4, kind: output, shape index: {0}]   ;;  %s4651_s5 = inlined_call_operand.vmem [shape: f32[2,1,1,1], index: 5, kind: output, shape index: {1}]   ;;  %s4652_s6 = inlined_call_operand.vmem [shape: f32[2,1,1,1], index: 6, kind: output, shape index: {2}]  }
   0x1   :  { %s3631_s23 = smov 0  }
   0x2 LB: > { %s3000_s24 = sadd.s32 4294967295, %s3586_s23   ;;  %s30_s25 = sadd.s32 1, %s3582_s22  ;;  %s3586_s23 = sphi %s3631_s23, %s18_s23   ;;  %s3582_s22 = sphi %s3629_s22, %s4664_s22   ;;  %s3578_s21 = sphi %s3627_s21, %s4663_s21  }
   0x3   : > { %p32_p0 = scmp.ge.s32.totalorder %s30_s25, 2  ;;  %p3002_p1 = scmp.ge.s32.totalorder %s3586_s23, 1 }
   0x4   : > { %p208_p2 = scmp.lt.s32.totalorder %s3586_s23, 3  ;;  %p3652_p4 = scmp.eq.s32.totalorder %s3000_s24, 0 }
   0x5   : > { %s4666_s25 = smov (%p32_p0, %s30_s25), 0  ;;  %s221_s30 = sshll.u32 %s4646_s0, 4  ;;  %s222_s30 = int_to_ptr.vmem [resolvable:$true] %s221_s30 }
   0x6   : > { %p3648_p3 = pnand %p3002_p1, %p208_p2  ;;  %s3545_s7 = scalar_lea.vmem %s222_s30, 16 }
   0x7   : > { %p3546_p7 = scmp.ne.s32.totalorder %s222_s30, %s3545_s7  ;;  %p3553_p11 = scmp.lt.s32.totalorder %s222_s30, %s222_s30 }
   0x8   : > { %p3462_p5 = pneg %p3648_p3  ;;  %p3554_p12 = scmp.lt.s32.totalorder %s3545_s7, %s3545_s7 }
   0xa   : > { %p3463_p6 = pnand %p3652_p4, %p3462_p5  ;;  %p3555_p13 = por %p3554_p12, %p3553_p11 }
   0xc   : > { %p3547_p8 = pneg %p3463_p6 }
   0xe   : > { %p3548_p9 = pnand %p3547_p8, %p3546_p7 }
  0x10   : > { %p3549_p10 = pneg %p3548_p9 }
  0x12   : > { %p3556_p0 = pnand %p3555_p13, %p3549_p10 }
  0x14   : > { %3559 = shalt.err (!%p3556_p0)
}
  0x15   : > { %s3588_s8 = smov [#allocation3]   ;;  %248 = sbr.rel (%p3648_p3) target bundleno = 807 (0x327), region = 36 }
  0x16   : > { %3465 = dma.vmem_to_smem (!%p3463_p6), %s222_s30, 16, %s3588_s8, [#allocation4]  }
  0x1c   : > { %3573 = dma.done.wait (%p3652_p4), [#allocation4], 16  }
  0x1d   : > { %3575 = vsyncadd (%p3652_p4), [#allocation4], 4294967280 }
  0x1e   : > { %254 = sfence }
  0x1f   : > { %vm329_vm0 = vcmask 24576   ;;  %vm330_vm1 = vsmask.f32 256  ;;  %v332_v0 = vld [vmem:[#allocation2] sm:$0x1]  ;;  %vm1057_vm4 = vcmask 27648  }
  0x20   : > { %vm3670_vm2 = vmand %vm329_vm0, %vm330_vm1  ;;  %vm386_vm3 = vsmask.f32 7938  ;;  %v388_v2 = vld [vmem:[#allocation2 + $0x8] sm:$0x1]  ;;  %v3589_v5 = vmov 0   ;;  %p296_p1 = scmp.lt.s32.totalorder %s3578_s21, 1 }
  0x21   : > { %v333_v3 = vsel %vm3670_vm2, 0, %v332_v0  ;;  %vm3677_vm5 = vmand %vm329_vm0, %vm386_vm3  ;;  %1231 = vst.msk [vmem:[#allocation2 + $0x4] sm:$0xf] %vm1057_vm4, %v3589_v5  ;;  %s325_s9 = sld [smem:[#allocation3]]  ;;  %v338_v7 = vld [vmem:[#allocation2 + $0x18] sm:$0x1] }
  0x22   : > { %1295 = vst.msk [vmem:[#allocation2 + $0xd0] sm:$0xf] %vm1057_vm4, %v3589_v5  ;;  %334 = vst [vmem:[#allocation2] sm:$0x1] %v333_v3  ;;  %v389_v6 = vsel %vm3677_vm5, 0, %v388_v2  ;;  %s3686_s10 = sld [smem:[#allocation3 + $0x1]] }
  0x23   : > { %390 = vst [vmem:[#allocation2 + $0x8] sm:$0x1] %v389_v6  ;;  %v339_v8 = vsel %vm3670_vm2, 0, %v338_v7  ;;  %v394_v9 = vld [vmem:[#allocation2 + $0x20] sm:$0x1]  ;;  %s4668_s21 = smov (!%p296_p1, %s3578_s21), 1  ;;  %vm3704_vm6 = vmand %vm1057_vm4, %vm386_vm3 }
  0x24   : > { %340 = vst [vmem:[#allocation2 + $0x18] sm:$0x1] %v339_v8  ;;  %v395_v10 = vsel %vm3677_vm5, 0, %v394_v9  ;;  %v335_v11 = vld [vmem:[#allocation2 + $0xc] sm:$0x1]  ;;  %s3161_s11 = sshll.u32 %s4668_s21, 8 }
  0x25   : > { %396 = vst [vmem:[#allocation2 + $0x20] sm:$0x1] %v395_v10  ;;  %v336_v12 = vsel %vm3670_vm2, 0, %v335_v11  ;;  %v391_v13 = vld [vmem:[#allocation2 + $0x14] sm:$0x1]  ;;  %s3713_s14 = scalar_lea.vmem %s4647_s1, %s3161_s11  ;;  %vm1822_vm7 = vcmask 1046528   ;;  %s4353_s8 = scalar_lea.vmem %s4650_s4, %s3161_s11 }
  0x26   : > { %v344_v14 = vld [vmem:[#allocation2 + $0x30] sm:$0x1]  ;;  %337 = vst [vmem:[#allocation2 + $0xc] sm:$0x1] %v336_v12  ;;  %v392_v15 = vsel %vm3677_vm5, 0, %v391_v13  ;;  %v447_v23 = vld [vmem:[%s3713_s14 + $0x18] sm:$0xff]  ;;  %s317_s11 = scalar_lea.vmem %s4651_s5, %s4668_s21 }
  0x27   : > { %v345_v16 = vsel %vm3670_vm2, 0, %v344_v14  ;;  %v400_v17 = vld [vmem:[#allocation2 + $0x38] sm:$0x1]  ;;  %393 = vst [vmem:[#allocation2 + $0x14] sm:$0x1] %v392_v15  ;;  %v446_v22 = vld [vmem:[%s3713_s14 + $0x10] sm:$0xff]  ;;  %v3719_v24 = vstv %s325_s9 }
  0x28   : > { %346 = vst [vmem:[#allocation2 + $0x30] sm:$0x1] %v345_v16  ;;  %v401_v19 = vsel %vm3677_vm5, 0, %v400_v17  ;;  %v341_v20 = vld [vmem:[#allocation2 + $0x24] sm:$0x1]  ;;  %v479_v28 = vmul.f32 %v3719_v24, %v446_v22  ;;  %v480_v29 = vmul.f32 %v3719_v24, %v447_v23  ;;  %v3728_v30 = vstv %s3686_s10  ;;  %v445_v32 = vld [vmem:[%s3713_s14 + $0x8] sm:$0xff] }
  0x29   : > { %v397_v21 = vld [vmem:[#allocation2 + $0x2c] sm:$0x1]  ;;  %402 = vst [vmem:[#allocation2 + $0x38] sm:$0x1] %v401_v19  ;;  %v342_v25 = vsel %vm3670_vm2, 0, %v341_v20  ;;  %v444_v31 = vld [vmem:[%s3713_s14] sm:$0xff]  ;;  %v478_v36 = vmul.f32 %v3719_v24, %v445_v32 }
  0x2a   : > { %v398_v26 = vsel %vm3677_vm5, 0, %v397_v21  ;;  %v1228_v27 = vld [vmem:[#allocation2] sm:$0xf]  ;;  %343 = vst [vmem:[#allocation2 + $0x24] sm:$0x1] %v342_v25  ;;  %v477_v35 = vmul.f32 %v3719_v24, %v444_v31  ;;  %v450_v37 = vld [vmem:[%s3713_s14 + $0x30] sm:$0xff]  ;;  %v512_v40 = vadd.f32 %v3728_v30, %v479_v28  ;;  %v513_v41 = vadd.f32 %v3728_v30, %v480_v29 }
  0x2b   : > { %399 = vst [vmem:[#allocation2 + $0x2c] sm:$0x1] %v398_v26  ;;  %v1229_v33 = vsel %vm3704_vm6, 0, %v1228_v27  ;;  %v1232_v34 = vld [vmem:[#allocation2 + $0x8] sm:$0x1]  ;;  %v451_v38 = vld [vmem:[%s3713_s14 + $0x38] sm:$0xff]  ;;  %v483_v42 = vmul.f32 %v3719_v24, %v450_v37  ;;  %v511_v46 = vadd.f32 %v3728_v30, %v478_v36 }
  0x2c   : > { %1230 = vst [vmem:[#allocation2] sm:$0xf] %v1229_v33  ;;  %v1233_v39 = vsel %vm3670_vm2, 0, %v1232_v34  ;;  %v448_v43 = vld [vmem:[%s3713_s14 + $0x20] sm:$0xff]  ;;  %v449_v44 = vld [vmem:[%s3713_s14 + $0x28] sm:$0xff]  ;;  %v510_v45 = vadd.f32 %v3728_v30, %v477_v35  ;;  %v484_v47 = vmul.f32 %v3719_v24, %v451_v38  ;;  %v3424_v49 = vround.rtne.f32 %v512_v40  ;;  %v454_v61 = vld [vmem:[%s3713_s14 + $0x50] sm:$0xff] }
  0x2d   : > { %1234 = vst [vmem:[#allocation2 + $0x8] sm:$0x1] %v1233_v39  ;;  %v481_v48 = vmul.f32 %v3719_v24, %v448_v43  ;;  %v3425_v50 = vround.rtne.f32 %v513_v41  ;;  %v516_v51 = vadd.f32 %v3728_v30, %v483_v42  ;;  %v482_v52 = vmul.f32 %v3719_v24, %v449_v44  ;;  %v455_v62 = vld [vmem:[%s3713_s14 + $0x58] sm:$0xff]  ;;  %v1300_v63 = vld [vmem:[#allocation2 + $0x4] sm:$0xf]  ;;  %s3590_s15 = smov 8  }
  0x2e   : > { %vm734_vm8 = vsmask.f32 4368  ;;  %v3422_v53 = vround.rtne.f32 %v510_v45  ;;  %v3423_v54 = vround.rtne.f32 %v511_v46  ;;  %v517_v55 = vadd.f32 %v3728_v30, %v484_v47  ;;  %v1067_v43 = vld [vmem:[#allocation2 + $0x18] sm:$0xf]  ;;  %v1071_v47 = vld [vmem:[#allocation2 + $0x20] sm:$0x1] }
  0x2f   : > { %v3753_v56 = vadd.f32 %v3728_v30, %v481_v48  ;;  %v576_v57 = vmax.f32 %v3424_v49, 0.0  ;;  %v577_v58 = vmax.f32 %v3425_v50, 0.0  ;;  %v3428_v59 = vround.rtne.f32 %v516_v51  ;;  %vm3779_vm10 = vmor %vm330_vm1, %vm734_vm8  ;;  %s3591_s16 = smov 4   ;;  %v1334_v46 = vld [vmem:[#allocation2 + $0xd0] sm:$0xf]  ;;  %s3012_s27 = sld [smem:[#allocation3 + $0x2]] }
  0x30   : > { %v3756_v60 = vadd.f32 %v3728_v30, %v482_v52  ;;  %vm1515_vm9 = vsmask.f32 7424  ;;  %v574_v0 = vmax.f32 %v3422_v53, 0.0  ;;  %v575_v2 = vmax.f32 %v3423_v54, 0.0 }
  0x31   : > { %v3429_v3 = vround.rtne.f32 %v517_v55  ;;  %v3426_v5 = vround.rtne.f32 %v3753_v56  ;;  %v608_v6 = vmin.f32 %v576_v57, 255.0  ;;  %v609_v7 = vmin.f32 %v577_v58, 255.0  ;;  %v1059_v55 = vld [vmem:[#allocation2 + $0xc] sm:$0xf]  ;;  %v347_v56 = vld [vmem:[#allocation2 + $0x3c] sm:$0x1] }
  0x32   : > { %v3761_v8 = vmax.f32 %v3428_v59, 0.0  ;;  %v3427_v9 = vround.rtne.f32 %v3756_v60  ;;  %v606_v12 = vmin.f32 %v574_v0, 255.0  ;;  %v607_v13 = vmin.f32 %v575_v2, 255.0 }
  0x33   : > { %v1353_v10 = vld [vmem:[#allocation2] sm:$0xe]  ;;  %v3765_v14 = vmul.f32 %v3719_v24, %v454_v61  ;;  %v3768_v15 = vmul.f32 %v3719_v24, %v455_v62  ;;  %v3165_v20 = vpack.c.bf16 %v608_v6, %v608_v6  ;;  %v3166_v21 = vpack.c.bf16 %v609_v7, %v609_v7  ;;  %v350_v62 = vld [vmem:[#allocation2 + $0x48] sm:$0x1] }
  0x34   : > { %v1299_v11 = vld [vmem:[#allocation2] sm:$0xf]  ;;  %v3496_v16 = vld [vmem:[#allocation2 + $0x8] ss:$0 sps:$4 sm:$0x11]   ;;  %v3089_v17 = vcombine.low %v1353_v10, %v1300_v63  ;;  %v3163_v22 = vpack.c.bf16 %v606_v12, %v606_v12  ;;  %v3164_v23 = vpack.c.bf16 %v607_v13, %v607_v13  ;;  %v581_v25 = vmax.f32 %v3429_v3, 0.0 }
  0x35   : > { %v3770_v19 = vcombine.low %v1299_v11, %v1300_v63  ;;  %v612_v26 = vmin.f32 %v3761_v8, 255.0  ;;  %v1824_v28 = vrot.slane %v3496_v16, 1  ;;  %v1524_v32 = vshll.u32 %v3496_v16, 16  ;;  %v1064_v3 = vld [vmem:[#allocation2 + $0x14] sm:$0x1] }
  0x36   : > { %v1823_v27 = vrot.slane %v3089_v17, 1  ;;  %v754_v33 = vshrl.u32 %v3165_v20, 16  ;;  %v757_v34 = vshll.u32 %v3165_v20, 16  ;;  %v762_v35 = vshrl.u32 %v3166_v21, 16  ;;  %v406_v20 = vld [vmem:[#allocation2 + $0x50] sm:$0x1] }
  0x37   : > { %v1517_v29 = vshrl.u32 %v3770_v19, 16  ;;  %v1519_v31 = vshll.u32 %v3770_v19, 16  ;;  %v765_v38 = vshll.u32 %v3166_v21, 16  ;;  %v737_v39 = vshrl.u32 %v3163_v22, 16 }
  0x38   : > { %v1825_v36 = vsel %vm1822_vm7, %v1823_v27, %v1824_v28  ;;  %v1526_v40 = vrot.slane %v1524_v32, 1  ;;  %v756_v41 = vrot.slane %v754_v33, 7  ;;  %v764_v42 = vrot.slane %v762_v35, 7  ;;  %v452_v32 = vld [vmem:[%s3713_s14 + $0x40] sm:$0xff]  ;;  %v453_v33 = vld [vmem:[%s3713_s14 + $0x48] sm:$0xff] }
  0x39   : > { %v1521_v37 = vrot.slane %v1519_v31, 1  ;;  %1877 = vrot.lane.b32.xlu1 %v1825_v36, %s3590_s15  ;;  %v740_v44 = vshll.u32 %v3163_v22, 16  ;;  %v739_v48 = vrot.slane %v737_v39, 7  ;;  %v745_v49 = vshrl.u32 %v3164_v23, 16  ;;  %v1081_v36 = vld [vmem:[#allocation2 + $0x30] sm:$0xf] }
  0x3a   : > { %v748_v50 = vshll.u32 %v3164_v23, 16  ;;  %v759_v51 = vor.u32 %v757_v34, %v756_v41  ;;  %v760_v52 = vrot.slane %v756_v41, 4  ;;  %v767_v53 = vor.u32 %v765_v38, %v764_v42  ;;  %v458_v34 = vld [vmem:[%s3713_s14 + $0x70] sm:$0xff] }
  0x3b   : > { %v1522_v45 = vor.u32 %v1521_v37, %v1517_v29  ;;  %v769_v54 = vrot.slane %v764_v42, 4  ;;  %v742_v58 = vor.u32 %v740_v44, %v739_v48  ;;  %v743_v59 = vrot.slane %v739_v48, 4  ;;  %v1085_v42 = vld [vmem:[#allocation2 + $0x38] sm:$0x1] }
  0x3c   : > { %v747_v61 = vrot.slane %v745_v49, 7  ;;  %v768_v63 = vsel %vm3779_vm10, %v760_v52, %v767_v53  ;;  %v1068_v0 = vsel %vm3704_vm6, %v759_v51, %v1067_v43  ;;  %v613_v6 = vmin.f32 %v581_v25, 255.0 }
  0x3d   : > { %v1527_v57 = vsel %vm1515_vm9, %v1522_v45, %v1526_v40  ;;  %v1072_v2 = vsel %vm3670_vm2, %v769_v54, %v1071_v47  ;;  %1069 = vst [vmem:[#allocation2 + $0x18] sm:$0xf] %v1068_v0  ;;  %1070 = vst.msk [vmem:[#allocation2 + $0x1c] sm:$0xf] %vm1057_vm4, %v768_v63  ;;  %v1060_v10 = vsel %vm3704_vm6, %v742_v58, %v1059_v55  ;;  %v578_v13 = vmax.f32 %v3426_v5, 0.0  ;;  %v459_v40 = vld [vmem:[%s3713_s14 + $0x78] sm:$0xff] }
  0x3e   : > { %1732 = vrot.lane.b32.xlu0 %v1527_v57, %s3591_s16  ;;  %1073 = vst [vmem:[#allocation2 + $0x20] sm:$0x1] %v1072_v2  ;;  %v750_v7 = vor.u32 %v748_v50, %v747_v61  ;;  %v752_v8 = vrot.slane %v747_v61, 4  ;;  %v3169_v11 = vpack.c.bf16 %v612_v26, %v612_v26  ;;  %1061 = vst [vmem:[#allocation2 + $0xc] sm:$0xf] %v1060_v10  ;;  %v579_v16 = vmax.f32 %v3427_v9, 0.0 }
  0x3f   : > { %v3170_v12 = vpack.c.bf16 %v613_v6, %v613_v6  ;;  %v351_v17 = vsel %vm3670_vm2, 0, %v350_v62  ;;  %v610_v9 = vmin.f32 %v578_v13, 255.0  ;;  %v407_v28 = vsel %vm3677_vm5, 0, %v406_v20 }
  0x40   : > { %v751_v21 = vsel %vm3779_vm10, %v743_v59, %v750_v7  ;;  %v1065_v22 = vsel %vm3670_vm2, %v752_v8, %v1064_v3  ;;  %v788_v23 = vshrl.u32 %v3169_v11, 16  ;;  %v791_v25 = vshll.u32 %v3169_v11, 16  ;;  %352 = vst [vmem:[#allocation2 + $0x48] sm:$0x1] %v351_v17  ;;  %408 = vst [vmem:[#allocation2 + $0x50] sm:$0x1] %v407_v28 }
  0x41   : > { %1063 = vst.msk [vmem:[#allocation2 + $0x10] sm:$0xf] %vm1057_vm4, %v751_v21  ;;  %1066 = vst [vmem:[#allocation2 + $0x14] sm:$0x1] %v1065_v22  ;;  %v796_v60 = vshrl.u32 %v3170_v12, 16  ;;  %v799_v5 = vshll.u32 %v3170_v12, 16  ;;  %v3809_v29 = vadd.f32 %v3728_v30, %v3765_v14  ;;  %v3813_v31 = vadd.f32 %v3728_v30, %v3768_v15 }
  0x42   : > { %v611_v26 = vmin.f32 %v579_v16, 255.0  ;;  %v790_v27 = vrot.slane %v788_v23, 7  ;;  %v3167_v37 = vpack.c.bf16 %v610_v9, %v610_v9  ;;  %v348_v39 = vsel %vm3670_vm2, 0, %v347_v56 }
  0x43   : > { %v798_v35 = vrot.slane %v796_v60, 7  ;;  %v3432_v43 = vround.rtne.f32 %v3809_v29  ;;  %v3433_v15 = vround.rtne.f32 %v3813_v31  ;;  %349 = vst [vmem:[#allocation2 + $0x3c] sm:$0x1] %v348_v39  ;;  %v485_v48 = vmul.f32 %v3719_v24, %v452_v32  ;;  %v403_v32 = vld [vmem:[#allocation2 + $0x44] sm:$0x1] }
  0x44   : > { %v3818_v38 = vpack.c.bf16 %v611_v26, %v611_v26  ;;  %v793_v41 = vor.u32 %v791_v25, %v790_v27  ;;  %v794_v14 = vrot.slane %v790_v27, 4  ;;  %v1303_v44 = vld [vmem:[#allocation2 + $0x18] sm:$0xf]  ;;  %v1304_v45 = vld [vmem:[#allocation2 + $0x1c] sm:$0xf]  ;;  %v486_v49 = vmul.f32 %v3719_v24, %v453_v33 }
  0x45   : > { %v801_v47 = vor.u32 %v799_v5, %v798_v35  ;;  %v3828_v50 = vmul.f32 %v3719_v24, %v458_v34  ;;  %v3830_v51 = vcombine.low %v1303_v44, %v1304_v45  ;;  %v3500_v52 = vld [vmem:[#allocation2 + $0x20] ss:$0 sps:$4 sm:$0x11]   ;;  %v1301_v53 = vld [vmem:[#allocation2 + $0xc] sm:$0xf]  ;;  %v803_v54 = vrot.slane %v798_v35, 4 }
  0x46   : > { %v1082_v55 = vsel %vm3704_vm6, %v793_v41, %v1081_v36  ;;  %v3835_v57 = vmul.f32 %v3719_v24, %v459_v40  ;;  %v1355_v58 = vld [vmem:[#allocation2 + $0x18] sm:$0xe]  ;;  %v1354_v59 = vld [vmem:[#allocation2 + $0xc] sm:$0xe]  ;;  %v771_v62 = vshrl.u32 %v3167_v37, 16  ;;  %v774_v63 = vshll.u32 %v3167_v37, 16 }
  0x47   : > { %v802_v61 = vsel %vm3779_vm10, %v794_v14, %v801_v47  ;;  %1083 = vst [vmem:[#allocation2 + $0x30] sm:$0xf] %v1082_v55  ;;  %v3840_v0 = vadd.f32 %v3728_v30, %v485_v48  ;;  %v1541_v2 = vshrl.u32 %v3830_v51, 16  ;;  %v1543_v3 = vshll.u32 %v3830_v51, 16  ;;  %v1074_v5 = vld [vmem:[#allocation2 + $0x24] sm:$0xf] }
  0x48   : > { %v1548_v6 = vshll.u32 %v3500_v52, 16  ;;  %v1302_v7 = vld [vmem:[#allocation2 + $0x10] sm:$0xf]  ;;  %v3091_v8 = vcombine.low %v1355_v58, %v1304_v45  ;;  %1084 = vst.msk [vmem:[#allocation2 + $0x34] sm:$0xf] %vm1057_vm4, %v802_v61  ;;  %v1830_v12 = vrot.slane %v3500_v52, 1  ;;  %v1086_v16 = vsel %vm3670_vm2, %v803_v54, %v1085_v42 }
  0x49   : > { %v3845_v10 = vcombine.low %v1301_v53, %v1302_v7  ;;  %v3502_v11 = vld [vmem:[#allocation2 + $0x14] ss:$0 sps:$4 sm:$0x11]   ;;  %v3090_v13 = vcombine.low %v1354_v59, %v1302_v7  ;;  %v1545_v17 = vrot.slane %v1543_v3, 1  ;;  %1087 = vst [vmem:[#allocation2 + $0x38] sm:$0x1] %v1086_v16  ;;  %v519_v58 = vadd.f32 %v3728_v30, %v486_v49 }
  0x4a   : > { %v1550_v20 = vrot.slane %v1548_v6, 1  ;;  %v1829_v21 = vrot.slane %v3091_v8, 1  ;;  %v773_v22 = vrot.slane %v771_v62, 7  ;;  %v1536_v56 = vshll.u32 %v3502_v11, 16  ;;  %v1078_v42 = vld [vmem:[#allocation2 + $0x2c] sm:$0x1] }
  0x4b   : > { %v1529_v23 = vshrl.u32 %v3845_v10, 16  ;;  %v1531_v25 = vshll.u32 %v3845_v10, 16  ;;  %v1826_v60 = vrot.slane %v3090_v13, 1  ;;  %v1546_v9 = vor.u32 %v1545_v17, %v1541_v2  ;;  %v356_v59 = vld [vmem:[#allocation2 + $0x60] sm:$0x1] }
  0x4c   : > { %v1831_v26 = vsel %vm1822_vm7, %v1829_v21, %v1830_v12  ;;  %v1827_v27 = vrot.slane %v3502_v11, 1  ;;  %v776_v28 = vor.u32 %v774_v63, %v773_v22  ;;  %v1538_v34 = vrot.slane %v1536_v56, 1  ;;  %v412_v16 = vld [vmem:[#allocation2 + $0x68] sm:$0x1] }
  0x4d   : > { %v1533_v33 = vrot.slane %v1531_v25, 1  ;;  %v777_v35 = vrot.slane %v773_v22, 4  ;;  %v779_v36 = vshrl.u32 %v3818_v38, 16  ;;  %v1551_v37 = vsel %vm1515_vm9, %v1546_v9, %v1550_v20 }
  0x4e   : > { %v1828_v39 = vsel %vm1822_vm7, %v1826_v60, %v1827_v27  ;;  %v1307_v40 = vld [vmem:[#allocation2 + $0x30] sm:$0xf]  ;;  %v782_v41 = vshll.u32 %v3818_v38, 16  ;;  %v1075_v14 = vsel %vm3704_vm6, %v776_v28, %v1074_v5  ;;  %1736 = vrot.lane.b32.xlu1 %v1551_v37, %s3591_s16  ;;  %v584_v52 = vmax.f32 %v3432_v43, 0.0  ;;  %v353_v28 = vld [vmem:[#allocation2 + $0x54] sm:$0x1] }
  0x4f   : > { %v1357_v44 = vld [vmem:[#allocation2 + $0x30] sm:$0xe]  ;;  %v1534_v45 = vor.u32 %v1533_v33, %v1529_v23  ;;  %v1308_v47 = vld [vmem:[#allocation2 + $0x34] sm:$0xf]  ;;  %v781_v48 = vrot.slane %v779_v36, 7  ;;  %v585_v53 = vmax.f32 %v3433_v15, 0.0  ;;  %v3430_v29 = vround.rtne.f32 %v3840_v0 }
  0x50   : > { %1076 = vst [vmem:[#allocation2 + $0x24] sm:$0xf] %v1075_v14  ;;  %v3863_v54 = vcombine.low %v1307_v40, %v1308_v47  ;;  %v3093_v38 = vcombine.low %v1357_v44, %v1308_v47  ;;  %v404_v55 = vsel %vm3677_vm5, 0, %v403_v32  ;;  %v3505_v62 = vld [vmem:[#allocation2 + $0x38] ss:$0 sps:$4 sm:$0x11]   ;;  %v3431_v13 = vround.rtne.f32 %v519_v58 }
  0x51   : > { %v1539_v61 = vsel %vm1515_vm9, %v1534_v45, %v1538_v34  ;;  %v784_v63 = vor.u32 %v782_v41, %v781_v48  ;;  %v786_v2 = vrot.slane %v781_v48, 4  ;;  %405 = vst [vmem:[#allocation2 + $0x44] sm:$0x1] %v404_v55  ;;  %v616_v3 = vmin.f32 %v584_v52, 255.0  ;;  %v1095_v45 = vld [vmem:[#allocation2 + $0x48] sm:$0xf] }
  0x52   : > { %1734 = vrot.lane.b32.xlu0 %v1539_v61, %s3591_s16  ;;  %v1565_v31 = vshrl.u32 %v3863_v54, 16  ;;  %v1567_v43 = vshll.u32 %v3863_v54, 16  ;;  %v1835_v15 = vrot.slane %v3093_v38, 1  ;;  %1881 = vrot.lane.b32.xlu1 %v1831_v26, %s3590_s15  ;;  %v1572_v49 = vshll.u32 %v3505_v62, 16 }
  0x53   : > { %v785_v6 = vsel %vm3779_vm10, %v777_v35, %v784_v63  ;;  %v1079_v7 = vsel %vm3670_vm2, %v786_v2, %v1078_v42  ;;  %v1836_v8 = vrot.slane %v3505_v62, 1  ;;  %v617_v0 = vmin.f32 %v585_v53, 255.0  ;;  %v1099_v63 = vld [vmem:[#allocation2 + $0x50] sm:$0x1] }
  0x54   : > { %v1569_v11 = vrot.slane %v1567_v43, 1  ;;  %1077 = vst.msk [vmem:[#allocation2 + $0x28] sm:$0xf] %vm1057_vm4, %v785_v6  ;;  %1080 = vst [vmem:[#allocation2 + $0x2c] sm:$0x1] %v1079_v7  ;;  %v3173_v12 = vpack.c.bf16 %v616_v3, %v616_v3  ;;  %v1574_v17 = vrot.slane %v1572_v49, 1  ;;  %v524_v27 = vadd.f32 %v3728_v30, %v3828_v50 }
  0x55   : > { %v1837_v20 = vsel %vm1822_vm7, %v1835_v15, %v1836_v8  ;;  %v582_v21 = vmax.f32 %v3430_v29, 0.0  ;;  %v357_v22 = vsel %vm3670_vm2, 0, %v356_v59  ;;  %v3174_v25 = vpack.c.bf16 %v617_v0, %v617_v0  ;;  %v1088_v7 = vld [vmem:[#allocation2 + $0x3c] sm:$0xf] }
  0x56   : > { %1879 = vrot.lane.b32.xlu0 %v1828_v39, %s3590_s15  ;;  %v1570_v23 = vor.u32 %v1569_v11, %v1565_v31  ;;  %v822_v56 = vshrl.u32 %v3173_v12, 16  ;;  %v825_v60 = vshll.u32 %v3173_v12, 16  ;;  %358 = vst [vmem:[#allocation2 + $0x60] sm:$0x1] %v357_v22  ;;  %v583_v5 = vmax.f32 %v3431_v13, 0.0  ;;  %v456_v22 = vld [vmem:[%s3713_s14 + $0x60] sm:$0xff] }
  0x57   : > { %v614_v9 = vmin.f32 %v582_v21, 255.0  ;;  %v413_v26 = vsel %vm3677_vm5, 0, %v412_v16  ;;  %v830_v34 = vshrl.u32 %v3174_v25, 16  ;;  %v833_v35 = vshll.u32 %v3174_v25, 16  ;;  %v1305_v36 = vld [vmem:[#allocation2 + $0x24] sm:$0xf] }
  0x58   : > { %v1575_v32 = vsel %vm1515_vm9, %v1570_v23, %v1574_v17  ;;  %v824_v33 = vrot.slane %v822_v56, 7  ;;  %414 = vst [vmem:[#allocation2 + $0x68] sm:$0x1] %v413_v26  ;;  %v1356_v37 = vld [vmem:[#allocation2 + $0x24] sm:$0xe]  ;;  %v615_v39 = vmin.f32 %v583_v5, 255.0  ;;  %v525_v41 = vadd.f32 %v3728_v30, %v3835_v57 }
  0x59   : > { %1740 = vrot.lane.b32.xlu1 %v1575_v32, %s3591_s16  ;;  %v3171_v40 = vpack.c.bf16 %v614_v9, %v614_v9  ;;  %v3436_v14 = vround.rtne.f32 %v524_v27  ;;  %v832_v50 = vrot.slane %v830_v34, 7  ;;  %v354_v47 = vsel %vm3670_vm2, 0, %v353_v28  ;;  %v409_v13 = vld [vmem:[#allocation2 + $0x5c] sm:$0x1]  ;;  %v457_v23 = vld [vmem:[%s3713_s14 + $0x68] sm:$0xff] }
  0x5a   : > { %v827_v42 = vor.u32 %v825_v60, %v824_v33  ;;  %v828_v44 = vrot.slane %v824_v33, 4  ;;  %v3172_v52 = vpack.c.bf16 %v615_v39, %v615_v39  ;;  %v3437_v55 = vround.rtne.f32 %v525_v41  ;;  %355 = vst [vmem:[#allocation2 + $0x54] sm:$0x1] %v354_v47  ;;  %v1092_v60 = vld [vmem:[#allocation2 + $0x44] sm:$0x1]  ;;  %v463_v41 = vld [vmem:[%s3713_s14 + $0x98] sm:$0xff] }
  0x5b   : > { %v1306_v48 = vld [vmem:[#allocation2 + $0x28] sm:$0xf]  ;;  %v805_v53 = vshrl.u32 %v3171_v40, 16  ;;  %v808_v38 = vshll.u32 %v3171_v40, 16  ;;  %v835_v62 = vor.u32 %v833_v35, %v832_v50  ;;  %v837_v57 = vrot.slane %v832_v50, 4  ;;  %v462_v40 = vld [vmem:[%s3713_s14 + $0x90] sm:$0xff] }
  0x5c   : > { %v3893_v58 = vcombine.low %v1305_v36, %v1306_v48  ;;  %v3507_v59 = vld [vmem:[#allocation2 + $0x2c] ss:$0 sps:$4 sm:$0x11]   ;;  %v3092_v61 = vcombine.low %v1356_v37, %v1306_v48  ;;  %v1096_v2 = vsel %vm3704_vm6, %v827_v42, %v1095_v45  ;;  %v813_v31 = vshrl.u32 %v3172_v52, 16  ;;  %v362_v26 = vld [vmem:[#allocation2 + $0x78] sm:$0x1] }
  0x5d   : > { %1885 = vrot.lane.b32.xlu1 %v1837_v20, %s3590_s15  ;;  %v807_v29 = vrot.slane %v805_v53, 7  ;;  %v816_v43 = vshll.u32 %v3172_v52, 16  ;;  %v1560_v49 = vshll.u32 %v3507_v59, 16  ;;  %1097 = vst [vmem:[#allocation2 + $0x48] sm:$0xf] %v1096_v2  ;;  %v1833_v8 = vrot.slane %v3507_v59, 1 }
  0x5e   : > { %v1553_v15 = vshrl.u32 %v3893_v58, 16  ;;  %v1555_v3 = vshll.u32 %v3893_v58, 16  ;;  %v1832_v6 = vrot.slane %v3092_v61, 1  ;;  %v836_v11 = vsel %vm3779_vm10, %v828_v44, %v835_v62  ;;  %v418_v34 = vld [vmem:[#allocation2 + $0x80] sm:$0x1] }
  0x5f   : > { %v1100_v0 = vsel %vm3670_vm2, %v837_v57, %v1099_v63  ;;  %v810_v12 = vor.u32 %v808_v38, %v807_v29  ;;  %v1562_v17 = vrot.slane %v1560_v49, 1  ;;  %1098 = vst.msk [vmem:[#allocation2 + $0x4c] sm:$0xf] %vm1057_vm4, %v836_v11  ;;  %v811_v20 = vrot.slane %v807_v29, 4 }
  0x60   : > { %v1557_v16 = vrot.slane %v1555_v3, 1  ;;  %1101 = vst [vmem:[#allocation2 + $0x50] sm:$0x1] %v1100_v0  ;;  %v815_v21 = vrot.slane %v813_v31, 7  ;;  %v1834_v25 = vsel %vm1822_vm7, %v1832_v6, %v1833_v8  ;;  %v588_v5 = vmax.f32 %v3436_v14, 0.0 }
  0x61   : > { %v1089_v56 = vsel %vm3704_vm6, %v810_v12, %v1088_v7  ;;  %v589_v9 = vmax.f32 %v3437_v55, 0.0  ;;  %v410_v33 = vsel %vm3677_vm5, 0, %v409_v13  ;;  %v489_v37 = vmul.f32 %v3719_v24, %v456_v22  ;;  %v359_v14 = vld [vmem:[#allocation2 + $0x6c] sm:$0x1] }
  0x62   : > { %v1558_v27 = vor.u32 %v1557_v16, %v1553_v15  ;;  %v818_v28 = vor.u32 %v816_v43, %v815_v21  ;;  %v820_v32 = vrot.slane %v815_v21, 4  ;;  %1090 = vst [vmem:[#allocation2 + $0x3c] sm:$0xf] %v1089_v56  ;;  %v620_v35 = vmin.f32 %v588_v5, 255.0  ;;  %411 = vst [vmem:[#allocation2 + $0x5c] sm:$0x1] %v410_v33 }
  0x63   : > { %v621_v36 = vmin.f32 %v589_v9, 255.0  ;;  %v490_v39 = vmul.f32 %v3719_v24, %v457_v23  ;;  %v363_v45 = vsel %vm3670_vm2, 0, %v362_v26  ;;  %v522_v38 = vadd.f32 %v3728_v30, %v489_v37  ;;  %v1109_v9 = vld [vmem:[#allocation2 + $0x60] sm:$0xf] }
  0x64   : > { %v1563_v42 = vsel %vm1515_vm9, %v1558_v27, %v1562_v17  ;;  %v819_v44 = vsel %vm3779_vm10, %v811_v20, %v818_v28  ;;  %v1093_v50 = vsel %vm3670_vm2, %v820_v32, %v1092_v60  ;;  %v1311_v47 = vld [vmem:[#allocation2 + $0x48] sm:$0xf]  ;;  %v3177_v52 = vpack.c.bf16 %v620_v35, %v620_v35  ;;  %364 = vst [vmem:[#allocation2 + $0x78] sm:$0x1] %v363_v45 }
  0x65   : > { %1738 = vrot.lane.b32.xlu0 %v1563_v42, %s3591_s16  ;;  %1091 = vst.msk [vmem:[#allocation2 + $0x40] sm:$0xf] %vm1057_vm4, %v819_v44  ;;  %1094 = vst [vmem:[#allocation2 + $0x44] sm:$0x1] %v1093_v50  ;;  %v1359_v48 = vld [vmem:[#allocation2 + $0x48] sm:$0xe]  ;;  %v3178_v53 = vpack.c.bf16 %v621_v36, %v621_v36  ;;  %v523_v55 = vadd.f32 %v3728_v30, %v490_v39  ;;  %v495_v61 = vmul.f32 %v3719_v24, %v462_v40 }
  0x66   : > { %v419_v59 = vsel %vm3677_vm5, 0, %v418_v34  ;;  %v496_v62 = vmul.f32 %v3719_v24, %v463_v41  ;;  %v360_v57 = vsel %vm3670_vm2, 0, %v359_v14  ;;  %v1312_v63 = vld [vmem:[#allocation2 + $0x4c] sm:$0xf]  ;;  %v856_v2 = vshrl.u32 %v3177_v52, 16 }
  0x67   : > { %v859_v29 = vshll.u32 %v3177_v52, 16  ;;  %v3434_v31 = vround.rtne.f32 %v522_v38  ;;  %v3435_v43 = vround.rtne.f32 %v523_v55  ;;  %420 = vst [vmem:[#allocation2 + $0x80] sm:$0x1] %v419_v59  ;;  %361 = vst [vmem:[#allocation2 + $0x6c] sm:$0x1] %v360_v57  ;;  %v3933_v15 = vcombine.low %v1311_v47, %v1312_v63  ;;  %v460_v59 = vld [vmem:[%s3713_s14 + $0x80] sm:$0xff] }
  0x68   : > { %v3510_v3 = vld [vmem:[#allocation2 + $0x50] ss:$0 sps:$4 sm:$0x11]   ;;  %v3095_v49 = vcombine.low %v1359_v48, %v1312_v63  ;;  %v864_v6 = vshrl.u32 %v3178_v53, 16  ;;  %v867_v7 = vshll.u32 %v3178_v53, 16  ;;  %v858_v11 = vrot.slane %v856_v2, 7 }
  0x69   : > { %1883 = vrot.lane.b32.xlu0 %v1834_v25, %s3590_s15  ;;  %v1309_v8 = vld [vmem:[#allocation2 + $0x3c] sm:$0xf]  ;;  %v586_v0 = vmax.f32 %v3434_v31, 0.0  ;;  %v528_v12 = vadd.f32 %v3728_v30, %v495_v61  ;;  %v529_v13 = vadd.f32 %v3728_v30, %v496_v62  ;;  %v1589_v16 = vshrl.u32 %v3933_v15, 16  ;;  %v1113_v39 = vld [vmem:[#allocation2 + $0x68] sm:$0x1] }
  0x6a   : > { %v1591_v17 = vshll.u32 %v3933_v15, 16  ;;  %v1596_v20 = vshll.u32 %v3510_v3, 16  ;;  %v1841_v21 = vrot.slane %v3095_v49, 1  ;;  %v1358_v22 = vld [vmem:[#allocation2 + $0x3c] sm:$0xe]  ;;  %v1842_v23 = vrot.slane %v3510_v3, 1 }
  0x6b   : > { %v861_v56 = vor.u32 %v859_v29, %v858_v11  ;;  %v862_v60 = vrot.slane %v858_v11, 4  ;;  %v866_v5 = vrot.slane %v864_v6, 7  ;;  %v3440_v28 = vround.rtne.f32 %v528_v12  ;;  %v415_v48 = vld [vmem:[#allocation2 + $0x74] sm:$0x1]  ;;  %v461_v61 = vld [vmem:[%s3713_s14 + $0x88] sm:$0xff] }
  0x6c   : > { %v1593_v25 = vrot.slane %v1591_v17, 1  ;;  %v1598_v26 = vrot.slane %v1596_v20, 1  ;;  %v1310_v27 = vld [vmem:[#allocation2 + $0x40] sm:$0xf]  ;;  %v3441_v32 = vround.rtne.f32 %v529_v13  ;;  %v1843_v35 = vsel %vm1822_vm7, %v1841_v21, %v1842_v23  ;;  %v368_v29 = vld [vmem:[#allocation2 + $0x90] sm:$0x1] }
  0x6d   : > { %v3940_v33 = vcombine.low %v1309_v8, %v1310_v27  ;;  %v3512_v34 = vld [vmem:[#allocation2 + $0x44] ss:$0 sps:$4 sm:$0x11]   ;;  %v3094_v36 = vcombine.low %v1358_v22, %v1310_v27  ;;  %v869_v37 = vor.u32 %v867_v7, %v866_v5  ;;  %v871_v41 = vrot.slane %v866_v5, 4  ;;  %v424_v17 = vld [vmem:[#allocation2 + $0x98] sm:$0x1] }
  0x6e   : > { %v1594_v40 = vor.u32 %v1593_v25, %v1589_v16  ;;  %v1110_v14 = vsel %vm3704_vm6, %v861_v56, %v1109_v9  ;;  %v587_v42 = vmax.f32 %v3435_v43, 0.0  ;;  %v1584_v45 = vshll.u32 %v3512_v34, 16  ;;  %v466_v56 = vld [vmem:[%s3713_s14 + $0xb0] sm:$0xff] }
  0x6f   : > { %v1577_v44 = vshrl.u32 %v3940_v33, 16  ;;  %v1579_v50 = vshll.u32 %v3940_v33, 16  ;;  %v1838_v47 = vrot.slane %v3094_v36, 1  ;;  %1111 = vst [vmem:[#allocation2 + $0x60] sm:$0xf] %v1110_v14  ;;  %v1839_v53 = vrot.slane %v3512_v34, 1 }
  0x70   : > { %v1599_v52 = vsel %vm1515_vm9, %v1594_v40, %v1598_v26  ;;  %v870_v38 = vsel %vm3779_vm10, %v862_v60, %v869_v37  ;;  %v1114_v55 = vsel %vm3670_vm2, %v871_v41, %v1113_v39  ;;  %v1586_v57 = vrot.slane %v1584_v45, 1 }
  0x71   : > { %1744 = vrot.lane.b32.xlu1 %v1599_v52, %s3591_s16  ;;  %v1581_v62 = vrot.slane %v1579_v50, 1  ;;  %1112 = vst.msk [vmem:[#allocation2 + $0x64] sm:$0xf] %vm1057_vm4, %v870_v38  ;;  %1115 = vst [vmem:[#allocation2 + $0x68] sm:$0x1] %v1114_v55  ;;  %v618_v63 = vmin.f32 %v586_v0, 255.0  ;;  %v1840_v31 = vsel %vm1822_vm7, %v1838_v47, %v1839_v53  ;;  %v493_v11 = vmul.f32 %v3719_v24, %v460_v59 }
  0x72   : > { %v619_v2 = vmin.f32 %v587_v42, 255.0  ;;  %v592_v43 = vmax.f32 %v3440_v28, 0.0  ;;  %v593_v3 = vmax.f32 %v3441_v32, 0.0  ;;  %v416_v49 = vsel %vm3677_vm5, 0, %v415_v48  ;;  %v1102_v32 = vld [vmem:[#allocation2 + $0x54] sm:$0xf] }
  0x73   : > { %v1582_v6 = vor.u32 %v1581_v62, %v1577_v44  ;;  %v3175_v7 = vpack.c.bf16 %v618_v63, %v618_v63  ;;  %417 = vst [vmem:[#allocation2 + $0x74] sm:$0x1] %v416_v49  ;;  %v494_v0 = vmul.f32 %v3719_v24, %v461_v61  ;;  %v369_v16 = vsel %vm3670_vm2, 0, %v368_v29  ;;  %v1106_v48 = vld [vmem:[#allocation2 + $0x5c] sm:$0x1] }
  0x74   : > { %v3176_v8 = vpack.c.bf16 %v619_v2, %v619_v2  ;;  %v624_v12 = vmin.f32 %v592_v43, 255.0  ;;  %v625_v13 = vmin.f32 %v593_v3, 255.0  ;;  %370 = vst [vmem:[#allocation2 + $0x90] sm:$0x1] %v369_v16  ;;  %v526_v26 = vadd.f32 %v3728_v30, %v493_v11  ;;  %v1123_v43 = vld [vmem:[#allocation2 + $0x78] sm:$0xf] }
  0x75   : > { %v1587_v20 = vsel %vm1515_vm9, %v1582_v6, %v1586_v57  ;;  %1889 = vrot.lane.b32.xlu1 %v1843_v35, %s3590_s15  ;;  %v839_v21 = vshrl.u32 %v3175_v7, 16  ;;  %v842_v22 = vshll.u32 %v3175_v7, 16  ;;  %v527_v36 = vadd.f32 %v3728_v30, %v494_v0  ;;  %v467_v3 = vld [vmem:[%s3713_s14 + $0xb8] sm:$0xff]  ;;  %v365_v16 = vld [vmem:[#allocation2 + $0x84] sm:$0x1] }
  0x76   : > { %v847_v23 = vshrl.u32 %v3176_v8, 16  ;;  %1742 = vrot.lane.b32.xlu0 %v1587_v20, %s3591_s16  ;;  %v1315_v60 = vld [vmem:[#allocation2 + $0x60] sm:$0xf]  ;;  %v850_v5 = vshll.u32 %v3176_v8, 16  ;;  %v3181_v9 = vpack.c.bf16 %v624_v12, %v624_v12  ;;  %v3182_v25 = vpack.c.bf16 %v625_v13, %v625_v13 }
  0x77   : > { %v841_v27 = vrot.slane %v839_v21, 7  ;;  %v1361_v34 = vld [vmem:[#allocation2 + $0x60] sm:$0xe]  ;;  %v425_v35 = vsel %vm3677_vm5, 0, %v424_v17  ;;  %v3438_v41 = vround.rtne.f32 %v526_v26  ;;  %v499_v14 = vmul.f32 %v3719_v24, %v466_v56  ;;  %v1127_v21 = vld [vmem:[#allocation2 + $0x80] sm:$0x1] }
  0x78   : > { %v849_v28 = vrot.slane %v847_v23, 7  ;;  %v1316_v37 = vld [vmem:[#allocation2 + $0x64] sm:$0xf]  ;;  %v890_v39 = vshrl.u32 %v3181_v9, 16  ;;  %v893_v40 = vshll.u32 %v3181_v9, 16  ;;  %v898_v55 = vshrl.u32 %v3182_v25, 16 }
  0x79   : > { %426 = vst [vmem:[#allocation2 + $0x98] sm:$0x1] %v425_v35  ;;  %v3972_v42 = vcombine.low %v1315_v60, %v1316_v37  ;;  %v3515_v44 = vld [vmem:[#allocation2 + $0x68] ss:$0 sps:$4 sm:$0x11]   ;;  %v844_v50 = vor.u32 %v842_v22, %v841_v27  ;;  %v845_v45 = vrot.slane %v841_v27, 4  ;;  %v3097_v53 = vcombine.low %v1361_v34, %v1316_v37 }
  0x7a   : > { %v852_v47 = vor.u32 %v850_v5, %v849_v28  ;;  %1887 = vrot.lane.b32.xlu0 %v1840_v31, %s3590_s15  ;;  %v854_v52 = vrot.slane %v849_v28, 4  ;;  %v892_v38 = vrot.slane %v890_v39, 7  ;;  %v1620_v62 = vshll.u32 %v3515_v44, 16  ;;  %v464_v26 = vld [vmem:[%s3713_s14 + $0xa0] sm:$0xff]  ;;  %v470_v35 = vld [vmem:[%s3713_s14 + $0xd0] sm:$0xff]  ;;  %v471_v37 = vld [vmem:[%s3713_s14 + $0xd8] sm:$0xff] }
  0x7b   : > { %v1613_v59 = vshrl.u32 %v3972_v42, 16  ;;  %v1615_v61 = vshll.u32 %v3972_v42, 16  ;;  %v1103_v63 = vsel %vm3704_vm6, %v844_v50, %v1102_v32  ;;  %v1847_v29 = vrot.slane %v3097_v53, 1 }
  0x7c   : > { %v853_v57 = vsel %vm3779_vm10, %v845_v45, %v852_v47  ;;  %v1107_v2 = vsel %vm3670_vm2, %v854_v52, %v1106_v48  ;;  %v1848_v31 = vrot.slane %v3515_v44, 1  ;;  %v1622_v6 = vrot.slane %v1620_v62, 1  ;;  %1104 = vst [vmem:[#allocation2 + $0x54] sm:$0xf] %v1103_v63 }
  0x7d   : > { %1105 = vst.msk [vmem:[#allocation2 + $0x58] sm:$0xf] %vm1057_vm4, %v853_v57  ;;  %v1617_v49 = vrot.slane %v1615_v61, 1  ;;  %1108 = vst [vmem:[#allocation2 + $0x5c] sm:$0x1] %v1107_v2  ;;  %v895_v7 = vor.u32 %v893_v40, %v892_v38  ;;  %v896_v8 = vrot.slane %v892_v38, 4  ;;  %v3439_v0 = vround.rtne.f32 %v527_v36 }
  0x7e   : > { %v1849_v11 = vsel %vm1822_vm7, %v1847_v29, %v1848_v31  ;;  %v900_v12 = vrot.slane %v898_v55, 7  ;;  %v901_v13 = vshll.u32 %v3182_v25, 16  ;;  %v590_v22 = vmax.f32 %v3438_v41, 0.0  ;;  %v421_v25 = vld [vmem:[#allocation2 + $0x8c] sm:$0x1] }
  0x7f   : > { %v1618_v17 = vor.u32 %v1617_v49, %v1613_v59  ;;  %v1124_v20 = vsel %vm3704_vm6, %v895_v7, %v1123_v43  ;;  %v500_v23 = vmul.f32 %v3719_v24, %v467_v3  ;;  %v591_v5 = vmax.f32 %v3439_v0, 0.0  ;;  %v465_v36 = vld [vmem:[%s3713_s14 + $0xa8] sm:$0xff] }
  0x80   : > { %v903_v56 = vor.u32 %v901_v13, %v900_v12  ;;  %v905_v60 = vrot.slane %v900_v12, 4  ;;  %1125 = vst [vmem:[#allocation2 + $0x78] sm:$0xf] %v1124_v20  ;;  %v532_v9 = vadd.f32 %v3728_v30, %v499_v14  ;;  %v622_v28 = vmin.f32 %v590_v22, 255.0 }
  0x81   : > { %v1623_v27 = vsel %vm1515_vm9, %v1618_v17, %v1622_v6  ;;  %v533_v32 = vadd.f32 %v3728_v30, %v500_v23  ;;  %v366_v34 = vsel %vm3670_vm2, 0, %v365_v16  ;;  %v623_v41 = vmin.f32 %v591_v5, 255.0 }
  0x82   : > { %1748 = vrot.lane.b32.xlu1 %v1623_v27, %s3591_s16  ;;  %v904_v39 = vsel %vm3779_vm10, %v896_v8, %v903_v56  ;;  %v1128_v40 = vsel %vm3670_vm2, %v905_v60, %v1127_v21  ;;  %v3444_v14 = vround.rtne.f32 %v532_v9  ;;  %367 = vst [vmem:[#allocation2 + $0x84] sm:$0x1] %v366_v34  ;;  %v3179_v50 = vpack.c.bf16 %v622_v28, %v622_v28  ;;  %v1116_v56 = vld [vmem:[#allocation2 + $0x6c] sm:$0xf] }
  0x83   : > { %1126 = vst.msk [vmem:[#allocation2 + $0x7c] sm:$0xf] %vm1057_vm4, %v904_v39  ;;  %1129 = vst [vmem:[#allocation2 + $0x80] sm:$0x1] %v1128_v40  ;;  %v3445_v45 = vround.rtne.f32 %v533_v32  ;;  %v422_v47 = vsel %vm3677_vm5, 0, %v421_v25  ;;  %v497_v48 = vmul.f32 %v3719_v24, %v464_v26  ;;  %v3180_v38 = vpack.c.bf16 %v623_v41, %v623_v41 }
  0x84   : > { %v1314_v44 = vld [vmem:[#allocation2 + $0x58] sm:$0xf]  ;;  %v1313_v52 = vld [vmem:[#allocation2 + $0x54] sm:$0xf]  ;;  %423 = vst [vmem:[#allocation2 + $0x8c] sm:$0x1] %v422_v47  ;;  %v4008_v55 = vmul.f32 %v3719_v24, %v465_v36  ;;  %v4011_v59 = vmul.f32 %v3719_v24, %v470_v35  ;;  %v4014_v61 = vmul.f32 %v3719_v24, %v471_v37 }
  0x85   : > { %v1360_v53 = vld [vmem:[#allocation2 + $0x54] sm:$0xe]  ;;  %v4016_v62 = vcombine.low %v1313_v52, %v1314_v44  ;;  %v3517_v57 = vld [vmem:[#allocation2 + $0x5c] ss:$0 sps:$4 sm:$0x11]   ;;  %v873_v2 = vshrl.u32 %v3179_v50, 16  ;;  %v530_v60 = vadd.f32 %v3728_v30, %v497_v48 }
  0x86   : > { %v3096_v63 = vcombine.low %v1360_v53, %v1314_v44  ;;  %v876_v29 = vshll.u32 %v3179_v50, 16  ;;  %1893 = vrot.lane.b32.xlu1 %v1849_v11, %s3590_s15  ;;  %v881_v31 = vshrl.u32 %v3180_v38, 16  ;;  %v884_v43 = vshll.u32 %v3180_v38, 16  ;;  %v1120_v35 = vld [vmem:[#allocation2 + $0x74] sm:$0x1] }
  0x87   : > { %v596_v3 = vmax.f32 %v3444_v14, 0.0  ;;  %v597_v49 = vmax.f32 %v3445_v45, 0.0  ;;  %v1601_v6 = vshrl.u32 %v4016_v62, 16  ;;  %v1603_v7 = vshll.u32 %v4016_v62, 16  ;;  %v1319_v13 = vld [vmem:[#allocation2 + $0x78] sm:$0xf] }
  0x88   : > { %v1608_v8 = vshll.u32 %v3517_v57, 16  ;;  %v1844_v12 = vrot.slane %v3096_v63, 1  ;;  %v1845_v0 = vrot.slane %v3517_v57, 1  ;;  %v875_v16 = vrot.slane %v873_v2, 7  ;;  %v1363_v20 = vld [vmem:[#allocation2 + $0x78] sm:$0xe] }
  0x89   : > { %v883_v17 = vrot.slane %v881_v31, 7  ;;  %v628_v21 = vmin.f32 %v596_v3, 255.0  ;;  %v1605_v22 = vrot.slane %v1603_v7, 1  ;;  %v629_v11 = vmin.f32 %v597_v49, 255.0  ;;  %v374_v57 = vld [vmem:[#allocation2 + $0xa8] sm:$0x1] }
  0x8a   : > { %v1610_v23 = vrot.slane %v1608_v8, 1  ;;  %v1846_v5 = vsel %vm1822_vm7, %v1844_v12, %v1845_v0  ;;  %v1320_v9 = vld [vmem:[#allocation2 + $0x7c] sm:$0xf]  ;;  %v878_v25 = vor.u32 %v876_v29, %v875_v16  ;;  %v879_v26 = vrot.slane %v875_v16, 4 }
  0x8b   : > { %v886_v27 = vor.u32 %v884_v43, %v883_v17  ;;  %v1606_v28 = vor.u32 %v1605_v22, %v1601_v6  ;;  %v4023_v32 = vcombine.low %v1319_v13, %v1320_v9  ;;  %v3520_v34 = vld [vmem:[#allocation2 + $0x80] ss:$0 sps:$4 sm:$0x11]   ;;  %v888_v36 = vrot.slane %v883_v17, 4  ;;  %v430_v43 = vld [vmem:[#allocation2 + $0xb0] sm:$0x1] }
  0x8c   : > { %v3099_v37 = vcombine.low %v1363_v20, %v1320_v9  ;;  %v1117_v40 = vsel %vm3704_vm6, %v878_v25, %v1116_v56  ;;  %v3185_v41 = vpack.c.bf16 %v628_v21, %v628_v21  ;;  %v3186_v14 = vpack.c.bf16 %v629_v11, %v629_v11  ;;  %v1137_v13 = vld [vmem:[#allocation2 + $0x90] sm:$0xf]  ;;  %v468_v17 = vld [vmem:[%s3713_s14 + $0xc0] sm:$0xff]  ;;  %v1141_v22 = vld [vmem:[#allocation2 + $0x98] sm:$0x1] }
  0x8d   : > { %v887_v39 = vsel %vm3779_vm10, %v879_v26, %v886_v27  ;;  %v1611_v44 = vsel %vm1515_vm9, %v1606_v28, %v1610_v23  ;;  %v1637_v50 = vshrl.u32 %v4023_v32, 16  ;;  %v1639_v45 = vshll.u32 %v4023_v32, 16  ;;  %1118 = vst [vmem:[#allocation2 + $0x6c] sm:$0xf] %v1117_v40 }
  0x8e   : > { %v1644_v47 = vshll.u32 %v3520_v34, 16  ;;  %1119 = vst.msk [vmem:[#allocation2 + $0x70] sm:$0xf] %vm1057_vm4, %v887_v39  ;;  %1746 = vrot.lane.b32.xlu0 %v1611_v44, %s3591_s16  ;;  %v1121_v48 = vsel %vm3670_vm2, %v888_v36, %v1120_v35  ;;  %v1853_v52 = vrot.slane %v3099_v37, 1  ;;  %v1854_v53 = vrot.slane %v3520_v34, 1 }
  0x8f   : > { %v924_v38 = vshrl.u32 %v3185_v41, 16  ;;  %v1641_v63 = vrot.slane %v1639_v45, 1  ;;  %1122 = vst [vmem:[#allocation2 + $0x74] sm:$0x1] %v1121_v48  ;;  %v927_v29 = vshll.u32 %v3185_v41, 16  ;;  %v932_v31 = vshrl.u32 %v3186_v14, 16 }
  0x90   : > { %v1646_v2 = vrot.slane %v1644_v47, 1  ;;  %v1855_v3 = vsel %vm1822_vm7, %v1853_v52, %v1854_v53  ;;  %v935_v6 = vshll.u32 %v3186_v14, 16  ;;  %v531_v7 = vadd.f32 %v3728_v30, %v4008_v55  ;;  %v371_v14 = vld [vmem:[#allocation2 + $0x9c] sm:$0x1] }
  0x91   : > { %v926_v49 = vrot.slane %v924_v38, 7  ;;  %v1642_v8 = vor.u32 %v1641_v63, %v1637_v50  ;;  %v934_v12 = vrot.slane %v932_v31, 7  ;;  %v3442_v0 = vround.rtne.f32 %v530_v60  ;;  %v469_v60 = vld [vmem:[%s3713_s14 + $0xc8] sm:$0xff] }
  0x92   : > { %v375_v16 = vsel %vm3670_vm2, 0, %v374_v57  ;;  %1891 = vrot.lane.b32.xlu0 %v1846_v5, %s3590_s15  ;;  %v3443_v23 = vround.rtne.f32 %v531_v7  ;;  %v431_v56 = vsel %vm3677_vm5, 0, %v430_v43  ;;  %v536_v34 = vadd.f32 %v3728_v30, %v4011_v59 }
  0x93   : > { %v929_v20 = vor.u32 %v927_v29, %v926_v49  ;;  %v930_v21 = vrot.slane %v926_v49, 4  ;;  %376 = vst [vmem:[#allocation2 + $0xa8] sm:$0x1] %v375_v16  ;;  %v1647_v55 = vsel %vm1515_vm9, %v1642_v8, %v1646_v2  ;;  %v937_v11 = vor.u32 %v935_v6, %v934_v12  ;;  %432 = vst [vmem:[#allocation2 + $0xb0] sm:$0x1] %v431_v56 }
  0x94   : > { %v939_v9 = vrot.slane %v934_v12, 4  ;;  %v594_v25 = vmax.f32 %v3442_v0, 0.0  ;;  %1752 = vrot.lane.b32.xlu1 %v1647_v55, %s3591_s16  ;;  %v1317_v26 = vld [vmem:[#allocation2 + $0x6c] sm:$0xf]  ;;  %v537_v36 = vadd.f32 %v3728_v30, %v4014_v61  ;;  %v501_v35 = vmul.f32 %v3719_v24, %v468_v17 }
  0x95   : > { %v1318_v27 = vld [vmem:[#allocation2 + $0x70] sm:$0xf]  ;;  %v1362_v5 = vld [vmem:[#allocation2 + $0x6c] sm:$0xe]  ;;  %v1138_v28 = vsel %vm3704_vm6, %v929_v20, %v1137_v13  ;;  %v938_v40 = vsel %vm3779_vm10, %v930_v21, %v937_v11  ;;  %v595_v59 = vmax.f32 %v3443_v23, 0.0  ;;  %v3448_v50 = vround.rtne.f32 %v536_v34 }
  0x96   : > { %v4055_v37 = vcombine.low %v1317_v26, %v1318_v27  ;;  %v3098_v39 = vcombine.low %v1362_v5, %v1318_v27  ;;  %1139 = vst [vmem:[#allocation2 + $0x90] sm:$0xf] %v1138_v28  ;;  %v1142_v41 = vsel %vm3670_vm2, %v939_v9, %v1141_v22  ;;  %v3522_v44 = vld [vmem:[#allocation2 + $0x74] ss:$0 sps:$4 sm:$0x11]   ;;  %v3449_v61 = vround.rtne.f32 %v537_v36 }
  0x97   : > { %1140 = vst.msk [vmem:[#allocation2 + $0x94] sm:$0xf] %vm1057_vm4, %v938_v40  ;;  %1143 = vst [vmem:[#allocation2 + $0x98] sm:$0x1] %v1142_v41  ;;  %v4063_v45 = vmul.f32 %v3719_v24, %v469_v60  ;;  %v626_v53 = vmin.f32 %v594_v25, 255.0  ;;  %v1632_v38 = vshll.u32 %v3522_v44, 16  ;;  %v4072_v11 = vadd.f32 %v3728_v30, %v501_v35 }
  0x98   : > { %v1625_v47 = vshrl.u32 %v4055_v37, 16  ;;  %v1627_v48 = vshll.u32 %v4055_v37, 16  ;;  %v1850_v52 = vrot.slane %v3098_v39, 1  ;;  %1897 = vrot.lane.b32.xlu1 %v1855_v3, %s3590_s15  ;;  %v1851_v57 = vrot.slane %v3522_v44, 1  ;;  %v427_v13 = vld [vmem:[#allocation2 + $0xa4] sm:$0x1] }
  0x99   : > { %v627_v63 = vmin.f32 %v595_v59, 255.0  ;;  %v600_v2 = vmax.f32 %v3448_v50, 0.0  ;;  %v3183_v31 = vpack.c.bf16 %v626_v53, %v626_v53  ;;  %v601_v43 = vmax.f32 %v3449_v61, 0.0  ;;  %v1130_v23 = vld [vmem:[#allocation2 + $0x84] sm:$0xf] }
  0x9a   : > { %v1629_v29 = vrot.slane %v1627_v48, 1  ;;  %v372_v49 = vsel %vm3670_vm2, 0, %v371_v14  ;;  %v1634_v6 = vrot.slane %v1632_v38, 1  ;;  %v1852_v7 = vsel %vm1822_vm7, %v1850_v52, %v1851_v57 }
  0x9b   : > { %v3184_v8 = vpack.c.bf16 %v627_v63, %v627_v63  ;;  %v632_v12 = vmin.f32 %v600_v2, 255.0  ;;  %373 = vst [vmem:[#allocation2 + $0x9c] sm:$0x1] %v372_v49  ;;  %v907_v16 = vshrl.u32 %v3183_v31, 16  ;;  %v910_v17 = vshll.u32 %v3183_v31, 16 }
  0x9c   : > { %v1630_v0 = vor.u32 %v1629_v29, %v1625_v47  ;;  %v633_v3 = vmin.f32 %v601_v43, 255.0  ;;  %v428_v27 = vsel %vm3677_vm5, 0, %v427_v13  ;;  %v1134_v47 = vld [vmem:[#allocation2 + $0x8c] sm:$0x1]  ;;  %v380_v31 = vld [vmem:[#allocation2 + $0xc0] sm:$0x1] }
  0x9d   : > { %v1323_v20 = vld [vmem:[#allocation2 + $0x90] sm:$0xf]  ;;  %v915_v21 = vshrl.u32 %v3184_v8, 16  ;;  %v918_v22 = vshll.u32 %v3184_v8, 16  ;;  %v3189_v55 = vpack.c.bf16 %v632_v12, %v632_v12  ;;  %v909_v60 = vrot.slane %v907_v16, 7 }
  0x9e   : > { %v1365_v56 = vld [vmem:[#allocation2 + $0x90] sm:$0xe]  ;;  %v1635_v9 = vsel %vm1515_vm9, %v1630_v0, %v1634_v6  ;;  %v1324_v25 = vld [vmem:[#allocation2 + $0x94] sm:$0xf]  ;;  %v3190_v26 = vpack.c.bf16 %v633_v3, %v633_v3  ;;  %429 = vst [vmem:[#allocation2 + $0xa4] sm:$0x1] %v428_v27  ;;  %v535_v3 = vadd.f32 %v3728_v30, %v4063_v45 }
  0x9f   : > { %1750 = vrot.lane.b32.xlu0 %v1635_v9, %s3591_s16  ;;  %v4078_v5 = vcombine.low %v1323_v20, %v1324_v25  ;;  %v3525_v28 = vld [vmem:[#allocation2 + $0x98] ss:$0 sps:$4 sm:$0x11]   ;;  %v917_v34 = vrot.slane %v915_v21, 7  ;;  %v3101_v36 = vcombine.low %v1365_v56, %v1324_v25  ;;  %v958_v39 = vshrl.u32 %v3189_v55, 16  ;;  %v474_v20 = vld [vmem:[%s3713_s14 + $0xf0] sm:$0xff] }
  0xa0   : > { %v912_v40 = vor.u32 %v910_v17, %v909_v60  ;;  %v913_v35 = vrot.slane %v909_v60, 4  ;;  %v961_v41 = vshll.u32 %v3189_v55, 16  ;;  %v966_v14 = vshrl.u32 %v3190_v26, 16  ;;  %v436_v12 = vld [vmem:[#allocation2 + $0xc8] sm:$0x1]  ;;  %v475_v21 = vld [vmem:[%s3713_s14 + $0xf8] sm:$0xff] }
  0xa1   : > { %v1661_v44 = vshrl.u32 %v4078_v5, 16  ;;  %v1663_v59 = vshll.u32 %v4078_v5, 16  ;;  %v1668_v50 = vshll.u32 %v3525_v28, 16  ;;  %v920_v61 = vor.u32 %v918_v22, %v917_v34  ;;  %v1155_v17 = vld [vmem:[#allocation2 + $0xb0] sm:$0x1] }
  0xa2   : > { %v922_v48 = vrot.slane %v917_v34, 4  ;;  %v1131_v52 = vsel %vm3704_vm6, %v912_v40, %v1130_v23  ;;  %v1859_v53 = vrot.slane %v3101_v36, 1  ;;  %v1860_v38 = vrot.slane %v3525_v28, 1  ;;  %v377_v9 = vld [vmem:[#allocation2 + $0xb4] sm:$0x1]  ;;  %v472_v28 = vld [vmem:[%s3713_s14 + $0xe0] sm:$0xff] }
  0xa3   : > { %1895 = vrot.lane.b32.xlu0 %v1852_v7, %s3590_s15  ;;  %v1665_v57 = vrot.slane %v1663_v59, 1  ;;  %v1670_v63 = vrot.slane %v1668_v50, 1  ;;  %v921_v2 = vsel %vm3779_vm10, %v913_v35, %v920_v61  ;;  %1132 = vst [vmem:[#allocation2 + $0x84] sm:$0xf] %v1131_v52  ;;  %v960_v29 = vrot.slane %v958_v39, 7  ;;  %v473_v34 = vld [vmem:[%s3713_s14 + $0xe8] sm:$0xff] }
  0xa4   : > { %1133 = vst.msk [vmem:[#allocation2 + $0x88] sm:$0xf] %vm1057_vm4, %v921_v2  ;;  %v1135_v43 = vsel %vm3670_vm2, %v922_v48, %v1134_v47  ;;  %v1861_v49 = vsel %vm1822_vm7, %v1859_v53, %v1860_v38  ;;  %v968_v6 = vrot.slane %v966_v14, 7  ;;  %v969_v8 = vshll.u32 %v3190_v26, 16  ;;  %v1151_v7 = vld [vmem:[#allocation2 + $0xa8] sm:$0xf] }
  0xa5   : > { %v1666_v13 = vor.u32 %v1665_v57, %v1661_v44  ;;  %1136 = vst [vmem:[#allocation2 + $0x8c] sm:$0x1] %v1135_v43  ;;  %v963_v0 = vor.u32 %v961_v41, %v960_v29  ;;  %v964_v16 = vrot.slane %v960_v29, 4  ;;  %v3446_v56 = vround.rtne.f32 %v4072_v11  ;;  %v433_v25 = vld [vmem:[#allocation2 + $0xbc] sm:$0x1] }
  0xa6   : > { %v971_v22 = vor.u32 %v969_v8, %v968_v6  ;;  %v973_v23 = vrot.slane %v968_v6, 4  ;;  %v381_v55 = vsel %vm3670_vm2, 0, %v380_v31  ;;  %v3447_v27 = vround.rtne.f32 %v535_v3  ;;  %v383_v35 = vld [vmem:[#allocation2 + $0xcc] sm:$0x1]  ;;  %v439_v41 = vld [vmem:[#allocation2 + $0xd4] sm:$0x1] }
  0xa7   : > { %v1671_v60 = vsel %vm1515_vm9, %v1666_v13, %v1670_v63  ;;  %v1152_v26 = vsel %vm3704_vm6, %v963_v0, %v1151_v7  ;;  %382 = vst [vmem:[#allocation2 + $0xc0] sm:$0x1] %v381_v55  ;;  %v437_v45 = vsel %vm3677_vm5, 0, %v436_v12  ;;  %v598_v39 = vmax.f32 %v3446_v56, 0.0 }
  0xa8   : > { %1756 = vrot.lane.b32.xlu1 %v1671_v60, %s3591_s16  ;;  %v972_v11 = vsel %vm3779_vm10, %v964_v16, %v971_v22  ;;  %1153 = vst [vmem:[#allocation2 + $0xa8] sm:$0xf] %v1152_v26  ;;  %v1156_v36 = vsel %vm3670_vm2, %v973_v23, %v1155_v17  ;;  %438 = vst [vmem:[#allocation2 + $0xc8] sm:$0x1] %v437_v45  ;;  %v507_v40 = vmul.f32 %v3719_v24, %v474_v20  ;;  %v1144_v60 = vld [vmem:[#allocation2 + $0x9c] sm:$0xf] }
  0xa9   : > { %1154 = vst.msk [vmem:[#allocation2 + $0xac] sm:$0xf] %vm1057_vm4, %v972_v11  ;;  %1157 = vst [vmem:[#allocation2 + $0xb0] sm:$0x1] %v1156_v36  ;;  %v599_v14 = vmax.f32 %v3447_v27, 0.0  ;;  %v508_v44 = vmul.f32 %v3719_v24, %v475_v21  ;;  %v378_v59 = vsel %vm3670_vm2, 0, %v377_v9  ;;  %v505_v53 = vmul.f32 %v3719_v24, %v472_v28 }
  0xaa   : > { %v434_v50 = vsel %vm3677_vm5, 0, %v433_v25  ;;  %v1321_v61 = vld [vmem:[#allocation2 + $0x84] sm:$0xf]  ;;  %v630_v48 = vmin.f32 %v598_v39, 255.0  ;;  %v540_v52 = vadd.f32 %v3728_v30, %v507_v40  ;;  %379 = vst [vmem:[#allocation2 + $0xb4] sm:$0x1] %v378_v59  ;;  %v506_v38 = vmul.f32 %v3719_v24, %v473_v34 }
  0xab   : > { %v1364_v47 = vld [vmem:[#allocation2 + $0x84] sm:$0xe]  ;;  %435 = vst [vmem:[#allocation2 + $0xbc] sm:$0x1] %v434_v50  ;;  %v1322_v57 = vld [vmem:[#allocation2 + $0x88] sm:$0xf]  ;;  %v541_v2 = vadd.f32 %v3728_v30, %v508_v44  ;;  %v538_v0 = vadd.f32 %v3728_v30, %v505_v53 }
  0xac   : > { %v631_v63 = vmin.f32 %v599_v14, 255.0  ;;  %v384_v29 = vsel %vm3670_vm2, 0, %v383_v35  ;;  %v440_v31 = vsel %vm3677_vm5, 0, %v439_v41  ;;  %v4125_v43 = vcombine.low %v1321_v61, %v1322_v57  ;;  %v3527_v6 = vld [vmem:[#allocation2 + $0x8c] ss:$0 sps:$4 sm:$0x11]   ;;  %1901 = vrot.lane.b32.xlu1 %v1861_v49, %s3590_s15 }
  0xad   : > { %v3100_v8 = vcombine.low %v1364_v47, %v1322_v57  ;;  %v3187_v7 = vpack.c.bf16 %v630_v48, %v630_v48  ;;  %v3452_v12 = vround.rtne.f32 %v540_v52  ;;  %385 = vst [vmem:[#allocation2 + $0xcc] sm:$0x1] %v384_v29  ;;  %441 = vst [vmem:[#allocation2 + $0xd4] sm:$0x1] %v440_v31  ;;  %v3453_v13 = vround.rtne.f32 %v541_v2  ;;  %v1148_v61 = vld [vmem:[#allocation2 + $0xa4] sm:$0x1] }
  0xae   : > { %v3188_v24 = vpack.c.bf16 %v631_v63, %v631_v63  ;;  %v539_v16 = vadd.f32 %v3728_v30, %v506_v38  ;;  %v1649_v17 = vshrl.u32 %v4125_v43, 16  ;;  %v1651_v4 = vshll.u32 %v4125_v43, 16 }
  0xaf   : > { %v1656_v3 = vshll.u32 %v3527_v6, 16  ;;  %v1856_v20 = vrot.slane %v3100_v8, 1  ;;  %v1857_v21 = vrot.slane %v3527_v6, 1  ;;  %v1327_v22 = vld [vmem:[#allocation2 + $0xa8] sm:$0xf]  ;;  %v941_v49 = vshrl.u32 %v3187_v7, 16 }
  0xb0   : > { %v944_v23 = vshll.u32 %v3187_v7, 16  ;;  %v949_v56 = vshrl.u32 %v3188_v24, 16  ;;  %v1653_v55 = vrot.slane %v1651_v4, 1  ;;  %v1328_v25 = vld [vmem:[#allocation2 + $0xac] sm:$0xf]  ;;  %v3450_v26 = vround.rtne.f32 %v538_v0 }
  0xb1   : > { %v1658_v9 = vrot.slane %v1656_v3, 1  ;;  %v3451_v27 = vround.rtne.f32 %v539_v16  ;;  %v1858_v45 = vsel %vm1822_vm7, %v1856_v20, %v1857_v21  ;;  %v4133_v30 = vcombine.low %v1327_v22, %v1328_v25  ;;  %v3530_v28 = vld [vmem:[#allocation2 + $0xb0] ss:$0 sps:$4 sm:$0x11]   ;;  %v1367_v40 = vld [vmem:[#allocation2 + $0xa8] sm:$0xe]  ;;  %v1733_v21 = vpop.permute.xlu0 %1732 }
  0xb2   : > { %v943_v34 = vrot.slane %v941_v49, 7  ;;  %v951_v11 = vrot.slane %v949_v56, 7  ;;  %v1654_v36 = vor.u32 %v1653_v55, %v1649_v17  ;;  %v952_v39 = vshll.u32 %v3188_v24, 16 }
  0xb3   : > { %v604_v35 = vmax.f32 %v3452_v12, 0.0  ;;  %v605_v41 = vmax.f32 %v3453_v13, 0.0  ;;  %v1685_v14 = vshrl.u32 %v4133_v30, 16  ;;  %v1687_v44 = vshll.u32 %v4133_v30, 16 }
  0xb4   : > { %v1692_v59 = vshll.u32 %v3530_v28, 16  ;;  %v946_v50 = vor.u32 %v944_v23, %v943_v34  ;;  %v1659_v47 = vsel %vm1515_vm9, %v1654_v36, %v1658_v9  ;;  %v947_v48 = vrot.slane %v943_v34, 4  ;;  %v1292_v29 = vld [vmem:[#allocation2 + $0xcc] sm:$0xf]  ;;  %v1296_v31 = vld [vmem:[#allocation2 + $0xd4] sm:$0x1] }
  0xb5   : > { %v954_v52 = vor.u32 %v952_v39, %v951_v11  ;;  %v956_v53 = vrot.slane %v951_v11, 4  ;;  %1754 = vrot.lane.b32.xlu0 %v1659_v47, %s3591_s16  ;;  %v1689_v38 = vrot.slane %v1687_v44, 1  ;;  %v3103_v2 = vcombine.low %v1367_v40, %v1328_v25  ;;  %v1165_v11 = vld [vmem:[#allocation2 + $0xc0] sm:$0xf] }
  0xb6   : > { %v1694_v57 = vrot.slane %v1692_v59, 1  ;;  %v1145_v63 = vsel %vm3704_vm6, %v946_v50, %v1144_v60  ;;  %v1866_v7 = vrot.slane %v3530_v28, 1  ;;  %v636_v12 = vmin.f32 %v604_v35, 255.0  ;;  %v1878_v60 = vpop.permute.xlu1 %1877 }
  0xb7   : > { %v955_v6 = vsel %vm3779_vm10, %v947_v48, %v954_v52  ;;  %1146 = vst [vmem:[#allocation2 + $0x9c] sm:$0xf] %v1145_v63  ;;  %v1149_v8 = vsel %vm3670_vm2, %v956_v53, %v1148_v61  ;;  %v1690_v24 = vor.u32 %v1689_v38, %v1685_v14  ;;  %v1865_v13 = vrot.slane %v3103_v2, 1  ;;  %v1169_v53 = vld [vmem:[#allocation2 + $0xc8] sm:$0x1] }
  0xb8   : > { %1147 = vst.msk [vmem:[#allocation2 + $0xa0] sm:$0xf] %vm1057_vm4, %v955_v6  ;;  %1150 = vst [vmem:[#allocation2 + $0xa4] sm:$0x1] %v1149_v8  ;;  %v637_v0 = vmin.f32 %v605_v41, 255.0  ;;  %v602_v16 = vmax.f32 %v3450_v26, 0.0  ;;  %v3193_v17 = vpack.c.bf16 %v636_v12, %v636_v12 }
  0xb9   : > { %v603_v4 = vmax.f32 %v3451_v27, 0.0  ;;  %v1293_v3 = vsel %vm3704_vm6, 0, %v1292_v29  ;;  %v1297_v20 = vsel %vm3670_vm2, 0, %v1296_v31  ;;  %1899 = vrot.lane.b32.xlu0 %v1858_v45, %s3590_s15  ;;  %v1695_v22 = vsel %vm1515_vm9, %v1690_v24, %v1694_v57  ;;  %v1158_v29 = vld [vmem:[#allocation2 + $0xb4] sm:$0xf] }
  0xba   : > { %v1867_v49 = vsel %vm1822_vm7, %v1865_v13, %v1866_v7  ;;  %v3194_v23 = vpack.c.bf16 %v637_v0, %v637_v0  ;;  %v634_v56 = vmin.f32 %v602_v16, 255.0  ;;  %1294 = vst [vmem:[#allocation2 + $0xcc] sm:$0xf] %v1293_v3  ;;  %1298 = vst [vmem:[#allocation2 + $0xd4] sm:$0x1] %v1297_v20  ;;  %1760 = vrot.lane.b32.xlu1 %v1695_v22, %s3591_s16  ;;  %v992_v55 = vshrl.u32 %v3193_v17, 16 }
  0xbb   : > { %v995_v9 = vshll.u32 %v3193_v17, 16  ;;  %v635_v25 = vmin.f32 %v603_v4, 255.0  ;;  %vm1913_vm11 = vcmask 31744   ;;  %vm1950_vm12 = vcmask 64512  }
  0xbc   : > { %v1000_v26 = vshrl.u32 %v3194_v23, 16  ;;  %v1003_v27 = vshll.u32 %v3194_v23, 16  ;;  %v3191_v28 = vpack.c.bf16 %v634_v56, %v634_v56  ;;  %v1915_v45 = vsel %vm1913_vm11, %v3770_v19, %v1733_v21 }
  0xbd   : > { %v994_v34 = vrot.slane %v992_v55, 7  ;;  %v3192_v36 = vpack.c.bf16 %v635_v25, %v635_v25  ;;  %vm1998_vm13 = vcmask 97280   ;;  %v1952_v14 = vsel %vm1950_vm12, %v1915_v45, %v1878_v60  ;;  %v3542_v25 = vld [vmem:[%s4648_s2 + $0x8] sm:$0x3f]   ;;  %v3543_v60 = vld [vmem:[%s4648_s2] sm:$0x3f]  }
  0xbe   : > { %v1325_v39 = vld [vmem:[#allocation2 + $0x9c] sm:$0xf]  ;;  %v1002_v35 = vrot.slane %v1000_v26, 7  ;;  %v975_v41 = vshrl.u32 %v3191_v28, 16  ;;  %1905 = vrot.lane.b32.xlu1 %v1867_v49, %s3590_s15  ;;  %v978_v61 = vshll.u32 %v3191_v28, 16  ;;  %3286 = vmatprep.mubr.msk.bf16.mxu0 %vm1998_vm13, %v1952_v14  ;;  %vm2031_vm14 = vcmask 1045504  }
  0xbf   : > { %v1366_v40 = vld [vmem:[#allocation2 + $0x9c] sm:$0xe]  ;;  %v1326_v44 = vld [vmem:[#allocation2 + $0xa0] sm:$0xf]  ;;  %v997_v59 = vor.u32 %v995_v9, %v994_v34  ;;  %v998_v50 = vrot.slane %v994_v34, 4  ;;  %v983_v2 = vshrl.u32 %v3192_v36, 16  ;;  %3418 = vmatprep.subr.msk.bf16.mxu1 %vm2031_vm14, %v3542_v25  ;;  %3419 = vmatprep.subr.msk.bf16.mxu0 %vm2031_vm14, %v3543_v60 }
  0xc0   : > { %v4159_v19 = vcombine.low %v1325_v39, %v1326_v44  ;;  %v3532_v47 = vld [vmem:[#allocation2 + $0xa4] ss:$0 sps:$4 sm:$0x11]   ;;  %v1005_v48 = vor.u32 %v1003_v27, %v1002_v35  ;;  %v1007_v52 = vrot.slane %v1002_v35, 4  ;;  %v3102_v38 = vcombine.low %v1366_v40, %v1326_v44  ;;  %v1737_v0 = vpop.permute.xlu1 %1736  ;;  %v1162_v49 = vld [vmem:[#allocation2 + $0xbc] sm:$0x1] }
  0xc1   : > { %v1166_v57 = vsel %vm3704_vm6, %v997_v59, %v1165_v11  ;;  %v977_v63 = vrot.slane %v975_v41, 7  ;;  %v1680_v8 = vshll.u32 %v3532_v47, 16  ;;  %v986_v7 = vshll.u32 %v3192_v36, 16  ;;  %v3544_v11 = vld [vmem:[%s4648_s2 + $0x10] sm:$0x3f]  }
  0xc2   : > { %v1673_v31 = vshrl.u32 %v4159_v19, 16  ;;  %v1675_v6 = vshll.u32 %v4159_v19, 16  ;;  %1167 = vst [vmem:[#allocation2 + $0xc0] sm:$0xf] %v1166_v57  ;;  %v1006_v12 = vsel %vm3779_vm10, %v998_v50, %v1005_v48  ;;  %v1170_v24 = vsel %vm3670_vm2, %v1007_v52, %v1169_v53  ;;  %v1333_v36 = vld [vmem:[#allocation2 + $0xcc] sm:$0xf] }
  0xc3   : > { %v980_v13 = vor.u32 %v978_v61, %v977_v63  ;;  %v1682_v17 = vrot.slane %v1680_v8, 1  ;;  %1168 = vst.msk [vmem:[#allocation2 + $0xc4] sm:$0xf] %vm1057_vm4, %v1006_v12  ;;  %1171 = vst [vmem:[#allocation2 + $0xc8] sm:$0x1] %v1170_v24  ;;  %v981_v4 = vrot.slane %v977_v63, 4  ;;  %v1919_v1 = vsel %vm1913_vm11, %v3830_v51, %v1737_v0 }
  0xc4   : > { %v1677_v16 = vrot.slane %v1675_v6, 1  ;;  %v985_v3 = vrot.slane %v983_v2, 7  ;;  %v1862_v20 = vrot.slane %v3102_v38, 1  ;;  %v1863_v21 = vrot.slane %v3532_v47, 1  ;;  %v1735_v9 = vpop.permute.xlu0 %1734  ;;  %v1882_v28 = vpop.permute.xlu1 %1881  ;;  %v1370_v47 = vld [vmem:[#allocation2 + $0xcc] sm:$0xe] }
  0xc5   : > { %v1159_v22 = vsel %vm3704_vm6, %v980_v13, %v1158_v29  ;;  %v1917_v39 = vsel %vm1913_vm11, %v3845_v10, %v1735_v9  ;;  %v2033_v40 = vsel %vm2031_vm14, %v3542_v25, 0  ;;  %v2204_v35 = vsel %vm2031_vm14, %v3543_v60, 0  ;;  %v3540_v12 = vld [vmem:[#allocation2 + $0xd4] ss:$0 sps:$4 sm:$0x11]  }
  0xc6   : > { %v1678_v23 = vor.u32 %v1677_v16, %v1673_v31  ;;  %v988_v56 = vor.u32 %v986_v7, %v985_v3  ;;  %v990_v55 = vrot.slane %v985_v3, 4  ;;  %1160 = vst [vmem:[#allocation2 + $0xb4] sm:$0xf] %v1159_v22  ;;  %v1864_v45 = vsel %vm1822_vm7, %v1862_v20, %v1863_v21  ;;  %3251 = vmatpush3.bf16.msra.mxu1 %v2033_v40 }
  0xc7   : > { %3285 = vmatpush3.bf16.msra.mxu0 %v2204_v35  ;;  %v4198_v59 = vsel %vm1950_vm12, %v1919_v1, %v1882_v28  ;;  %3420 = vmatprep.subr.msk.bf16.mxu1 %vm2031_vm14, %v3543_v60  ;;  %v4206_v61 = vcombine.low %v1333_v36, %v1334_v46  ;;  %v2375_v48 = vsel %vm2031_vm14, %v3544_v11, 0  ;;  %v3106_v24 = vcombine.low %v1370_v47, %v1334_v46 }
  0xc8   : > { %v1683_v26 = vsel %vm1515_vm9, %v1678_v23, %v1682_v17  ;;  %v989_v18 = vsel %vm3779_vm10, %v981_v4, %v988_v56  ;;  %v1163_v27 = vsel %vm3670_vm2, %v990_v55, %v1162_v49  ;;  %v1880_v41 = vpop.permute.xlu0 %1879  ;;  %3421 = vmatprep.subr.msk.bf16.mxu0 %vm2031_vm14, %v3544_v11  ;;  %v1728_v55 = vshll.u32 %v3540_v12, 16 }
  0xc9   : > { %1758 = vrot.lane.b32.xlu0 %v1683_v26, %s3591_s16  ;;  %v1331_v34 = vld [vmem:[#allocation2 + $0xc0] sm:$0xf]  ;;  %1161 = vst.msk [vmem:[#allocation2 + $0xb8] sm:$0xf] %vm1057_vm4, %v989_v18  ;;  %1164 = vst [vmem:[#allocation2 + $0xbc] sm:$0x1] %v1163_v27  ;;  %v1954_v51 = vsel %vm1950_vm12, %v1917_v39, %v1880_v41 }
  0xca   : > { %v1332_v14 = vld [vmem:[#allocation2 + $0xc4] sm:$0xf]  ;;  %v1369_v44 = vld [vmem:[#allocation2 + $0xc0] sm:$0xe]  ;;  %3252 = vmatprep.mubr.msk.bf16.mxu1 %vm1998_vm13, %v1954_v51  ;;  %3287 = vmatmul.mubr.msk.bf16.vlgmr.msra.gmra.mrb[0].mxu0 %vm1998_vm13, %v1954_v51  ;;  %v1723_v17 = vshll.u32 %v4206_v61, 16  ;;  %v1721_v25 = vshrl.u32 %v4206_v61, 16 }
  0xcb   : > { %v4201_v50 = vcombine.low %v1331_v34, %v1332_v14  ;;  %v3535_v10 = vld [vmem:[#allocation2 + $0xc8] ss:$0 sps:$4 sm:$0x11]   ;;  %v3105_v63 = vcombine.low %v1369_v44, %v1332_v14  ;;  %3253 = vmatmul.mubr.msk.bf16.vlgmr.msra.gmra.mrb[0].mxu1 %vm1998_vm13, %v4198_v59  ;;  %3290 = vmatprep.mubr.msk.bf16.mxu0 %vm1998_vm13, %v4198_v59  ;;  %v1741_v49 = vpop.permute.xlu1 %1740  ;;  %v1874_v60 = vrot.slane %v3106_v24, 1  ;;  %v1875_v26 = vrot.slane %v3540_v12, 1 }
  0xcc   : > { %v1716_v38 = vshll.u32 %v3535_v10, 16  ;;  %3353 = vmatpush3.bf16.msra.mxu1 %v2204_v35  ;;  %3319 = vmatpush3.bf16.msra.mxu0 %v2375_v48  ;;  %v1872_v16 = vrot.slane %v3535_v10, 1  ;;  %v1730_v40 = vrot.slane %v1728_v55, 1  ;;  %v1923_v35 = vsel %vm1913_vm11, %v3863_v54, %v1741_v49 }
  0xcd   : > { %1903 = vrot.lane.b32.xlu0 %v1864_v45, %s3590_s15  ;;  %v1709_v52 = vshrl.u32 %v4201_v50, 16  ;;  %v1711_v53 = vshll.u32 %v4201_v50, 16  ;;  %v1329_v57 = vld [vmem:[#allocation2 + $0xb4] sm:$0xf]  ;;  %v1871_v0 = vrot.slane %v3105_v63, 1  ;;  %v1725_v45 = vrot.slane %v1723_v17, 1 }
  0xce   : > { %v1368_v2 = vld [vmem:[#allocation2 + $0xb4] sm:$0xe]  ;;  %v1718_v31 = vrot.slane %v1716_v38, 1  ;;  %v1876_v36 = vsel %vm1822_vm7, %v1874_v60, %v1875_v26  ;;  %vm2747_vm15 = vcmask 0  }
  0xcf   : > { %v1713_v29 = vrot.slane %v1711_v53, 1  ;;  %v1873_v9 = vsel %vm1822_vm7, %v1871_v0, %v1872_v16  ;;  %v1886_v46 = vpop.permute.xlu1 %1885  ;;  %v1726_v39 = vor.u32 %v1725_v45, %v1721_v25 }
  0xd0   : > { %v1330_v6 = vld [vmem:[#allocation2 + $0xb8] sm:$0xf]  ;;  %v3537_v7 = vld [vmem:[#allocation2 + $0xbc] ss:$0 sps:$4 sm:$0x11]   ;;  %v1960_v14 = vsel %vm1950_vm12, %v1923_v35, %v1886_v46 }
  0xd1   : > { %v4217_v8 = vcombine.low %v1329_v57, %v1330_v6  ;;  %v1714_v13 = vor.u32 %v1713_v29, %v1709_v52  ;;  %v1704_v20 = vshll.u32 %v3537_v7, 16  ;;  %v3104_v21 = vcombine.low %v1368_v2, %v1330_v6 }
  0xd2   : > { %v1869_v28 = vrot.slane %v3537_v7, 1  ;;  %v1731_v10 = vsel %vm1515_vm9, %v1726_v39, %v1730_v40 }
  0xd3   : > { %v1697_v4 = vshrl.u32 %v4217_v8, 16  ;;  %v1699_v3 = vshll.u32 %v4217_v8, 16  ;;  %v1719_v22 = vsel %vm1515_vm9, %v1714_v13, %v1718_v31  ;;  %v1706_v56 = vrot.slane %v1704_v20, 1 }
  0xd4   : > { %1764 = vrot.lane.b32.xlu1 %v1719_v22, %s3591_s16  ;;  %v1868_v27 = vrot.slane %v3104_v21, 1 }
  0xd5   : > { %v1701_v23 = vrot.slane %v1699_v3, 1 }
  0xd6   : > { %v1870_v1 = vsel %vm1822_vm7, %v1868_v27, %v1869_v28 }
  0xd7   : > { %v1702_v18 = vor.u32 %v1701_v23, %v1697_v4  ;;  %v1739_v11 = vpop.permute.xlu0 %1738 }
  0xd8   : > { %1909 = vrot.lane.b32.xlu1 %v1873_v9, %s3590_s15  ;;  %v1921_v41 = vsel %vm1913_vm11, %v3893_v58, %v1739_v11 }
  0xd9   : > { %v1707_v34 = vsel %vm1515_vm9, %v1702_v18, %v1706_v56 }
  0xda   : > { %1762 = vrot.lane.b32.xlu0 %v1707_v34, %s3591_s16 }
  0xdb   : > { %v1884_v44 = vpop.permute.xlu0 %1883 }
  0xdc   : > { %1911 = vrot.lane.b32.xlu1 %v1876_v36, %s3590_s15  ;;  %v1958_v51 = vsel %vm1950_vm12, %v1921_v41, %v1884_v44 }
  0xdd   : > { %3256 = vmatprep.mubr.msk.bf16.mxu1 %vm1998_vm13, %v1958_v51  ;;  %3291 = vmatmul.mubr.msk.bf16.gmra.mrb[4].mxu0 %vm1998_vm13, %v1958_v51 }
  0xde   : > { %1907 = vrot.lane.b32.xlu0 %v1870_v1, %s3590_s15  ;;  %3257 = vmatmul.mubr.msk.bf16.gmra.mrb[4].mxu1 %vm1998_vm13, %v1960_v14  ;;  %s323_s15 = scalar_lea.vmem %s4652_s6, %s4668_s21 }
  0xdf   : > { %3294 = vmatprep.mubr.msk.bf16.mxu0 %vm1998_vm13, %v1960_v14 }
  0xe2   : > { %1766 = vrot.lane.b32.xlu0 %v1731_v10, %s3591_s16 }
  0xe3   : > { %v1745_v54 = vpop.permute.xlu1 %1744 }
  0xe4   : > { %v1927_v48 = vsel %vm1913_vm11, %v3933_v15, %v1745_v54 }
  0xe7   : > { %v1890_v47 = vpop.permute.xlu1 %1889 }
  0xe8   : > { %v1743_v58 = vpop.permute.xlu0 %1742  ;;  %v1964_v53 = vsel %vm1950_vm12, %v1927_v48, %v1890_v47 }
  0xe9   : > { %v1925_v52 = vsel %vm1913_vm11, %v3940_v33, %v1743_v58 }
  0xec   : > { %v1888_v38 = vpop.permute.xlu0 %1887 }
  0xed   : > { %v1962_v57 = vsel %vm1950_vm12, %v1925_v52, %v1888_v38 }
  0xee   : > { %3260 = vmatprep.mubr.msk.bf16.mxu1 %vm1998_vm13, %v1962_v57  ;;  %3295 = vmatmul.mubr.msk.bf16.gmra.mrb[8].mxu0 %vm1998_vm13, %v1962_v57 }
  0xef   : > { %3261 = vmatmul.mubr.msk.bf16.gmra.mrb[8].mxu1 %vm1998_vm13, %v1964_v53  ;;  %3298 = vmatprep.mubr.msk.bf16.mxu0 %vm1998_vm13, %v1964_v53 }
  0xf4   : > { %v1749_v63 = vpop.permute.xlu1 %1748 }
  0xf5   : > { %v1931_v15 = vsel %vm1913_vm11, %v3972_v42, %v1749_v63  ;;  %v4345_v63 = vstv %s3012_s27 }
  0xf8   : > { %v1894_v29 = vpop.permute.xlu1 %1893 }
  0xf9   : > { %v1968_v31 = vsel %vm1950_vm12, %v1931_v15, %v1894_v29 }
 0x100   : > { %v1747_v2 = vpop.permute.xlu0 %1746 }
 0x101   : > { %v1929_v33 = vsel %vm1913_vm11, %v4016_v62, %v1747_v2 }
 0x104   : > { %v1892_v6 = vpop.permute.xlu0 %1891 }
 0x105   : > { %v1966_v7 = vsel %vm1950_vm12, %v1929_v33, %v1892_v6 }
 0x106   : > { %3264 = vmatprep.mubr.msk.bf16.mxu1 %vm1998_vm13, %v1966_v7  ;;  %3299 = vmatmul.mubr.msk.bf16.gmra.mrb[12].mxu0 %vm1998_vm13, %v1966_v7  ;;  %v1753_v12 = vpop.permute.xlu1 %1752 }
 0x107   : > { %3265 = vmatmul.mubr.msk.bf16.gmra.mrb[12].mxu1 %vm1998_vm13, %v1968_v31  ;;  %3320 = vmatprep.mubr.msk.bf16.mxu0 %vm1998_vm13, %v4198_v59  ;;  %v1935_v24 = vsel %vm1913_vm11, %v4023_v32, %v1753_v12 }
 0x10a   : > { %v1898_v62 = vpop.permute.xlu1 %1897 }
 0x10b   : > { %v1972_v0 = vsel %vm1950_vm12, %v1935_v24, %v1898_v62 }
 0x10e   : > { %3321 = vmatmul.mubr.msk.bf16.vlgmr.msra.gmra.mrb[0].mxu0 %vm1998_vm13, %v1958_v51 }
 0x10f   : > { %3324 = vmatprep.mubr.msk.bf16.mxu0 %vm1998_vm13, %v1960_v14 }
 0x111   : > { %v1751_v42 = vpop.permute.xlu0 %1750 }
 0x112   : > { %v1933_v13 = vsel %vm1913_vm11, %v4055_v37, %v1751_v42 }
 0x115   : > { %v1896_v16 = vpop.permute.xlu0 %1895 }
 0x116   : > { %v1970_v17 = vsel %vm1950_vm12, %v1933_v13, %v1896_v16  ;;  %3325 = vmatmul.mubr.msk.bf16.gmra.mrb[4].mxu0 %vm1998_vm13, %v1962_v57 }
 0x117   : > { %3268 = vmatprep.mubr.msk.bf16.mxu1 %vm1998_vm13, %v1970_v17  ;;  %3328 = vmatprep.mubr.msk.bf16.mxu0 %vm1998_vm13, %v1964_v53  ;;  %v4343_v53 = vld [vmem:[%s4649_s3] ss:$0 sm:$0xff] }
 0x118   : > { %3269 = vmatmul.mubr.msk.bf16.gmra.mrb[16].mxu1 %vm1998_vm13, %v1972_v0 }
 0x11a   : > { %v1757_v32 = vpop.permute.xlu1 %1756 }
 0x11b   : > { %v1939_v4 = vsel %vm1913_vm11, %v4078_v5, %v1757_v32 }
 0x11e   : > { %3329 = vmatmul.mubr.msk.bf16.gmra.mrb[8].mxu0 %vm1998_vm13, %v1966_v7  ;;  %v1902_v37 = vpop.permute.xlu1 %1901 }
 0x11f   : > { %3332 = vmatprep.mubr.msk.bf16.mxu0 %vm1998_vm13, %v1968_v31  ;;  %v1976_v20 = vsel %vm1950_vm12, %v1939_v4, %v1902_v37 }
 0x126   : > { %3333 = vmatmul.mubr.msk.bf16.gmra.mrb[12].mxu0 %vm1998_vm13, %v1970_v17 }
 0x127   : > { %v1755_v59 = vpop.permute.xlu0 %1754  ;;  %3336 = vmatprep.mubr.msk.bf16.mxu0 %vm1998_vm13, %v1972_v0 }
 0x128   : > { %v1937_v3 = vsel %vm1913_vm11, %v4125_v43, %v1755_v59 }
 0x12b   : > { %v1900_v21 = vpop.permute.xlu0 %1899 }
 0x12c   : > { %v1974_v22 = vsel %vm1950_vm12, %v1937_v3, %v1900_v21  ;;  %v1761_v49 = vpop.permute.xlu1 %1760 }
 0x12d   : > { %3272 = vmatprep.mubr.msk.bf16.mxu1 %vm1998_vm13, %v1974_v22  ;;  %v1943_v5 = vsel %vm1913_vm11, %v4133_v30, %v1761_v49 }
 0x12e   : > { %3273 = vmatmul.mubr.msk.bf16.gmra.mrb[20].mxu1 %vm1998_vm13, %v1976_v20  ;;  %3337 = vmatmul.mubr.msk.bf16.gmra.mrb[16].mxu0 %vm1998_vm13, %v1974_v22 }
 0x12f   : > { %3340 = vmatprep.mubr.msk.bf16.mxu0 %vm1998_vm13, %v1976_v20 }
 0x130   : > { %v1906_v56 = vpop.permute.xlu1 %1905 }
 0x131   : > { %v1980_v55 = vsel %vm1950_vm12, %v1943_v5, %v1906_v56 }
 0x13b   : > { %v1759_v23 = vpop.permute.xlu0 %1758 }
 0x13c   : > { %v1941_v43 = vsel %vm1913_vm11, %v4159_v19, %v1759_v23 }
 0x13f   : > { %v1904_v9 = vpop.permute.xlu0 %1903 }
 0x140   : > { %v1978_v25 = vsel %vm1950_vm12, %v1941_v43, %v1904_v9 }
 0x141   : > { %3276 = vmatprep.mubr.msk.bf16.mxu1 %vm1998_vm13, %v1978_v25  ;;  %3341 = vmatmul.mubr.msk.bf16.gmra.mrb[20].mxu0 %vm1998_vm13, %v1978_v25 }
 0x142   : > { %3277 = vmatmul.mubr.msk.bf16.gmra.mrb[24].mxu1 %vm1998_vm13, %v1980_v55  ;;  %3344 = vmatprep.mubr.msk.bf16.mxu0 %vm1998_vm13, %v1980_v55 }
 0x146   : > { %v1765_v60 = vpop.permute.xlu1 %1764 }
 0x147   : > { %v1947_v30 = vsel %vm1913_vm11, %v4201_v50, %v1765_v60 }
 0x14a   : > { %v1910_v18 = vpop.permute.xlu1 %1909 }
 0x14b   : > { %v1984_v27 = vsel %vm1950_vm12, %v1947_v30, %v1910_v18 }
 0x14c   : > { %v1763_v26 = vpop.permute.xlu0 %1762 }
 0x14d   : > { %v1945_v19 = vsel %vm1913_vm11, %v4217_v8, %v1763_v26 }
 0x14e   : > { %v1912_v50 = vpop.permute.xlu1 %1911 }
 0x150   : > { %v1908_v28 = vpop.permute.xlu0 %1907 }
 0x151   : > { %v1982_v45 = vsel %vm1950_vm12, %v1945_v19, %v1908_v28 }
 0x152   : > { %3280 = vmatprep.mubr.msk.bf16.mxu1 %vm1998_vm13, %v1982_v45  ;;  %3345 = vmatmul.mubr.msk.bf16.gmra.mrb[24].mxu0 %vm1998_vm13, %v1982_v45 }
 0x153   : > { %3281 = vmatmul.mubr.msk.bf16.gmra.mrb[28].mxu1 %vm1998_vm13, %v1984_v27  ;;  %3348 = vmatprep.mubr.msk.bf16.mxu0 %vm1998_vm13, %v1984_v27 }
 0x154   : > { %3302 = vmatprep.mubr.msk.bf16.mxu1 %vm1998_vm13, %v1968_v31  ;;  %v1767_v34 = vpop.permute.xlu0 %1766 }
 0x155   : > { %v1949_v8 = vsel %vm1913_vm11, %v4206_v61, %v1767_v34 }
 0x156   : > { %v1986_v11 = vsel %vm1950_vm12, %v1949_v8, %v1912_v50 }
 0x15a   : > { %3349 = vmatmul.mubr.msk.bf16.gmra.mrb[28].mxu0 %vm1998_vm13, %v1986_v11 }
 0x15b   : > { %3303 = vmatmul.mubr.msk.bf16.vlgmr.msra.gmra.mrb[16].mxu1 %vm1998_vm13, %v1970_v17 }
 0x15c   : > { %3306 = vmatprep.mubr.msk.bf16.mxu1 %vm1998_vm13, %v1972_v0 }
 0x163   : > { %3307 = vmatmul.mubr.msk.bf16.gmra.mrb[20].mxu1 %vm1998_vm13, %v1974_v22 }
 0x164   : > { %3310 = vmatprep.mubr.msk.bf16.mxu1 %vm1998_vm13, %v1976_v20 }
 0x16b   : > { %3311 = vmatmul.mubr.msk.bf16.gmra.mrb[24].mxu1 %vm1998_vm13, %v1978_v25 }
 0x16c   : > { %3314 = vmatprep.mubr.msk.bf16.mxu1 %vm1998_vm13, %v1980_v55 }
 0x173   : > { %3315 = vmatmul.mubr.msk.bf16.gmra.mrb[28].mxu1 %vm1998_vm13, %v1982_v45 }
 0x19e   : > { %v3254_v36 = vpop.f32.mrb[0].mxu1 }
 0x19f   : > { %v2069_v61 = vpop.f32.mrb[1].mxu1 }
 0x1a0   : > { %v3255_v46 = vpop.f32.mrb[2].mxu1 }
 0x1a1   : > { %v2072_v1 = vpop.f32.mrb[3].mxu1 }
 0x1b1   : > { %v3258_v39 = vpop.f32.mrb[4].mxu1 }
 0x1b2   : > { %v2085_v40 = vpop.f32.mrb[5].mxu1 }
 0x1b3   : > { %v3259_v35 = vpop.f32.mrb[6].mxu1 }
 0x1b4   : > { %v2088_v41 = vpop.f32.mrb[7].mxu1 }
 0x1c2   : > { %v4324_v14 = vpop.f32.mrb[8].mxu1 }
 0x1c3   : > { %v4326_v44 = vpop.f32.mrb[9].mxu1 }
 0x1c4   : > { %v4328_v51 = vpop.f32.mrb[10].mxu1 }
 0x1c5   : > { %v4330_v10 = vpop.f32.mrb[11].mxu1 }
 0x1da   : > { %v4332_v54 = vpop.f32.mrb[12].mxu1 }
 0x1db   : > { %v4334_v58 = vpop.f32.mrb[13].mxu1 }
 0x1dc   : > { %v4336_v47 = vpop.f32.mrb[14].mxu1 }
 0x1dd   : > { %v4338_v48 = vpop.f32.mrb[15].mxu1 }
 0x1e1   : > { %v3322_v52 = vpop.f32.mrb[0].mxu0 }
 0x1e2   : > { %v3354_v38 = vadd.f32 %v3322_v52, %v3254_v36  ;;  %v2411_v57 = vpop.f32.mrb[1].mxu0 }
 0x1e3   : > { %v3355_v2 = vadd.f32 %v2411_v57, %v2069_v61  ;;  %v3323_v29 = vpop.f32.mrb[2].mxu0 }
 0x1e4   : > { %v2579_v15 = vadd.f32 %v3354_v38, %v4343_v53  ;;  %v3356_v33 = vadd.f32 %v3323_v29, %v3255_v46  ;;  %v2414_v31 = vpop.f32.mrb[3].mxu0 }
 0x1e5   : > { %v2577_v6 = vadd.f32 %v3355_v2, %v4343_v53  ;;  %v3357_v7 = vadd.f32 %v2414_v31, %v2072_v1 }
 0x1e6   : > { %v2612_v12 = vmul.f32 %v4345_v63, %v2579_v15  ;;  %v2580_v42 = vadd.f32 %v3356_v33, %v4343_v53 }
 0x1e7   : > { %v2610_v62 = vmul.f32 %v4345_v63, %v2577_v6  ;;  %v2578_v24 = vadd.f32 %v3357_v7, %v4343_v53 }
 0x1e8   : > { %2644 = vst.msk [vmem:[%s4353_s8 + $0x10] sm:$0xff] %vm1950_vm12, %v2612_v12  ;;  %v2613_v13 = vmul.f32 %v4345_v63, %v2580_v42  ;;  %v2676_v21 = vsel %vm1950_vm12, %v2612_v12, inf  ;;  %v2751_v23 = vsel %vm1950_vm12, %v2612_v12, -inf }
 0x1e9   : > { %2642 = vst.msk [vmem:[%s4353_s8] sm:$0xff] %vm1950_vm12, %v2610_v62  ;;  %v2611_v0 = vmul.f32 %v4345_v63, %v2578_v24  ;;  %v3326_v16 = vpop.f32.mrb[4].mxu0  ;;  %v2674_v56 = vsel %vm1950_vm12, %v2610_v62, inf  ;;  %v2749_v55 = vsel %vm1950_vm12, %v2610_v62, -inf }
 0x1ea   : > { %2645 = vst.msk [vmem:[%s4353_s8 + $0x18] sm:$0xff] %vm1950_vm12, %v2613_v13  ;;  %v3358_v17 = vadd.f32 %v3326_v16, %v3258_v39  ;;  %v2427_v32 = vpop.f32.mrb[5].mxu0  ;;  %v2677_v9 = vsel %vm1950_vm12, %v2613_v13, inf  ;;  %v2752_v26 = vsel %vm1950_vm12, %v2613_v13, -inf }
 0x1eb   : > { %2643 = vst.msk [vmem:[%s4353_s8 + $0x8] sm:$0xff] %vm1950_vm12, %v2611_v0  ;;  %v3359_v59 = vadd.f32 %v2427_v32, %v2085_v40  ;;  %v3327_v37 = vpop.f32.mrb[6].mxu0  ;;  %v2675_v52 = vsel %vm1950_vm12, %v2611_v0, inf  ;;  %v2750_v38 = vsel %vm1950_vm12, %v2611_v0, -inf }
 0x1ec   : > { %v2583_v4 = vadd.f32 %v3358_v17, %v4343_v53  ;;  %v3360_v3 = vadd.f32 %v3327_v37, %v3259_v35  ;;  %v2430_v20 = vpop.f32.mrb[7].mxu0 }
 0x1ed   : > { %v2581_v22 = vadd.f32 %v3359_v59, %v4343_v53  ;;  %v3361_v49 = vadd.f32 %v2430_v20, %v2088_v41 }
 0x1ee   : > { %v2616_v5 = vmul.f32 %v4345_v63, %v2583_v4  ;;  %v2584_v43 = vadd.f32 %v3360_v3, %v4343_v53 }
 0x1ef   : > { %v2614_v25 = vmul.f32 %v4345_v63, %v2581_v22  ;;  %v2582_v60 = vadd.f32 %v3361_v49, %v4343_v53 }
 0x1f0   : > { %2648 = vst.msk [vmem:[%s4353_s8 + $0x30] sm:$0xff] %vm1950_vm12, %v2616_v5  ;;  %v2682_v18 = vsel %vm1950_vm12, %v2616_v5, inf  ;;  %v2757_v30 = vsel %vm1950_vm12, %v2616_v5, -inf  ;;  %v2617_v19 = vmul.f32 %v4345_v63, %v2584_v43 }
 0x1f1   : > { %v2683_v27 = vmin.f32 %v2676_v21, %v2682_v18  ;;  %v2758_v28 = vmax.f32 %v2751_v23, %v2757_v30  ;;  %2646 = vst.msk [vmem:[%s4353_s8 + $0x20] sm:$0xff] %vm1950_vm12, %v2614_v25  ;;  %v2678_v45 = vsel %vm1950_vm12, %v2614_v25, inf  ;;  %v2753_v34 = vsel %vm1950_vm12, %v2614_v25, -inf  ;;  %v3330_v50 = vpop.f32.mrb[8].mxu0 }
 0x1f2   : > { %v2679_v8 = vmin.f32 %v2674_v56, %v2678_v45  ;;  %v2754_v11 = vmax.f32 %v2749_v55, %v2753_v34  ;;  %2649 = vst.msk [vmem:[%s4353_s8 + $0x38] sm:$0xff] %vm1950_vm12, %v2617_v19  ;;  %v2684_v36 = vsel %vm1950_vm12, %v2617_v19, inf  ;;  %v2759_v61 = vsel %vm1950_vm12, %v2617_v19, -inf  ;;  %v2443_v46 = vpop.f32.mrb[9].mxu0 }
 0x1f3   : > { %v2685_v1 = vmin.f32 %v2677_v9, %v2684_v36  ;;  %v2760_v39 = vmax.f32 %v2752_v26, %v2759_v61  ;;  %v2615_v40 = vmul.f32 %v4345_v63, %v2582_v60  ;;  %v3362_v35 = vadd.f32 %v3330_v50, %v4324_v14  ;;  %v3331_v41 = vpop.f32.mrb[10].mxu0 }
 0x1f4   : > { %v3363_v57 = vadd.f32 %v2443_v46, %v4326_v44  ;;  %v3364_v2 = vadd.f32 %v3331_v41, %v4328_v51  ;;  %v2446_v29 = vpop.f32.mrb[11].mxu0 }
 0x1f5   : > { %2647 = vst.msk [vmem:[%s4353_s8 + $0x28] sm:$0xff] %vm1950_vm12, %v2615_v40  ;;  %v2680_v15 = vsel %vm1950_vm12, %v2615_v40, inf  ;;  %v2755_v33 = vsel %vm1950_vm12, %v2615_v40, -inf  ;;  %v2587_v31 = vadd.f32 %v3362_v35, %v4343_v53  ;;  %v3365_v14 = vadd.f32 %v2446_v29, %v4330_v10 }
 0x1f6   : > { %v2681_v6 = vmin.f32 %v2675_v52, %v2680_v15  ;;  %v2756_v7 = vmax.f32 %v2750_v38, %v2755_v33  ;;  %v2585_v12 = vadd.f32 %v3363_v57, %v4343_v53  ;;  %v2588_v44 = vadd.f32 %v3364_v2, %v4343_v53 }
 0x1f7   : > { %v2620_v51 = vmul.f32 %v4345_v63, %v2587_v31  ;;  %v2586_v42 = vadd.f32 %v3365_v14, %v4343_v53 }
 0x1f8   : > { %v2618_v62 = vmul.f32 %v4345_v63, %v2585_v12  ;;  %v2621_v24 = vmul.f32 %v4345_v63, %v2588_v44 }
 0x1f9   : > { %2652 = vst.msk [vmem:[%s4353_s8 + $0x50] sm:$0xff] %vm1950_vm12, %v2620_v51  ;;  %v2690_v10 = vsel %vm1950_vm12, %v2620_v51, inf  ;;  %v2765_v13 = vsel %vm1950_vm12, %v2620_v51, -inf  ;;  %v2619_v0 = vmul.f32 %v4345_v63, %v2586_v42  ;;  %v3334_v16 = vpop.f32.mrb[12].mxu0 }
 0x1fa   : > { %v4418_v17 = vmin.f32 %v2683_v27, %v2690_v10  ;;  %v4420_v32 = vmax.f32 %v2758_v28, %v2765_v13  ;;  %2650 = vst.msk [vmem:[%s4353_s8 + $0x40] sm:$0xff] %vm1950_vm12, %v2618_v62  ;;  %v2686_v59 = vsel %vm1950_vm12, %v2618_v62, inf  ;;  %v2761_v37 = vsel %vm1950_vm12, %v2618_v62, -inf  ;;  %2653 = vst.msk [vmem:[%s4353_s8 + $0x58] sm:$0xff] %vm1950_vm12, %v2621_v24  ;;  %v2459_v4 = vpop.f32.mrb[13].mxu0 }
 0x1fb   : > { %v4428_v3 = vmin.f32 %v2679_v8, %v2686_v59  ;;  %v4430_v20 = vmax.f32 %v2754_v11, %v2761_v37  ;;  %v2692_v21 = vsel %vm1950_vm12, %v2621_v24, inf  ;;  %v2767_v22 = vsel %vm1950_vm12, %v2621_v24, -inf  ;;  %2651 = vst.msk [vmem:[%s4353_s8 + $0x48] sm:$0xff] %vm1950_vm12, %v2619_v0  ;;  %v3335_v49 = vpop.f32.mrb[14].mxu0 }
 0x1fc   : > { %v4436_v23 = vmin.f32 %v2685_v1, %v2692_v21  ;;  %v4438_v56 = vmax.f32 %v2760_v39, %v2767_v22  ;;  %v2688_v5 = vsel %vm1950_vm12, %v2619_v0, inf  ;;  %v2763_v43 = vsel %vm1950_vm12, %v2619_v0, -inf  ;;  %v2462_v55 = vpop.f32.mrb[15].mxu0 }
 0x1fd   : > { %v4442_v9 = vmin.f32 %v2681_v6, %v2688_v5  ;;  %v4444_v25 = vmax.f32 %v2756_v7, %v2763_v43  ;;  %v3366_v60 = vadd.f32 %v3334_v16, %v4332_v54  ;;  %v3367_v26 = vadd.f32 %v2459_v4, %v4334_v58 }
 0x1fe   : > { %v3368_v18 = vadd.f32 %v3335_v49, %v4336_v47  ;;  %v3369_v30 = vadd.f32 %v2462_v55, %v4338_v48 }
 0x1ff   : > { %v2591_v19 = vadd.f32 %v3366_v60, %v4343_v53  ;;  %v2589_v27 = vadd.f32 %v3367_v26, %v4343_v53 }
 0x200   : > { %v2592_v28 = vadd.f32 %v3368_v18, %v4343_v53  ;;  %v2590_v45 = vadd.f32 %v3369_v30, %v4343_v53 }
 0x201   : > { %v2624_v34 = vmul.f32 %v4345_v63, %v2591_v19  ;;  %v2622_v50 = vmul.f32 %v4345_v63, %v2589_v27  ;;  %v3338_v54 = vpop.f32.mrb[16].mxu0 }
 0x202   : > { %v2625_v58 = vmul.f32 %v4345_v63, %v2592_v28  ;;  %v2623_v47 = vmul.f32 %v4345_v63, %v2590_v45  ;;  %v2475_v48 = vpop.f32.mrb[17].mxu0 }
 0x203   : > { %2656 = vst.msk [vmem:[%s4353_s8 + $0x70] sm:$0xff] %vm1950_vm12, %v2624_v34  ;;  %v2698_v8 = vsel %vm1950_vm12, %v2624_v34, inf  ;;  %v2773_v11 = vsel %vm1950_vm12, %v2624_v34, -inf  ;;  %2654 = vst.msk [vmem:[%s4353_s8 + $0x60] sm:$0xff] %vm1950_vm12, %v2622_v50  ;;  %v2694_v36 = vsel %vm1950_vm12, %v2622_v50, inf  ;;  %v2769_v61 = vsel %vm1950_vm12, %v2622_v50, -inf }
 0x204   : > { %v3339_v46 = vpop.f32.mrb[18].mxu0  ;;  %v2699_v1 = vmin.f32 %v4418_v17, %v2698_v8  ;;  %v2774_v39 = vmax.f32 %v4420_v32, %v2773_v11  ;;  %v2695_v40 = vmin.f32 %v4428_v3, %v2694_v36  ;;  %v2770_v35 = vmax.f32 %v4430_v20, %v2769_v61  ;;  %2657 = vst.msk [vmem:[%s4353_s8 + $0x78] sm:$0xff] %vm1950_vm12, %v2625_v58 }
 0x205   : > { %2655 = vst.msk [vmem:[%s4353_s8 + $0x68] sm:$0xff] %vm1950_vm12, %v2623_v47  ;;  %v2478_v41 = vpop.f32.mrb[19].mxu0  ;;  %v2700_v52 = vsel %vm1950_vm12, %v2625_v58, inf  ;;  %v2775_v38 = vsel %vm1950_vm12, %v2625_v58, -inf  ;;  %v2696_v57 = vsel %vm1950_vm12, %v2623_v47, inf  ;;  %v2771_v2 = vsel %vm1950_vm12, %v2623_v47, -inf }
 0x206   : > { %v2701_v29 = vmin.f32 %v4436_v23, %v2700_v52  ;;  %v2776_v15 = vmax.f32 %v4438_v56, %v2775_v38  ;;  %v2697_v33 = vmin.f32 %v4442_v9, %v2696_v57  ;;  %v2772_v31 = vmax.f32 %v4444_v25, %v2771_v2 }
 0x214   : > { %v3342_v14 = vpop.f32.mrb[20].mxu0 }
 0x215   : > { %v2491_v6 = vpop.f32.mrb[21].mxu0 }
 0x216   : > { %v3343_v7 = vpop.f32.mrb[22].mxu0 }
 0x217   : > { %v2494_v12 = vpop.f32.mrb[23].mxu0 }
 0x225   : > { %v4482_v44 = vpop.f32.mrb[24].mxu0 }
 0x226   : > { %v4484_v51 = vpop.f32.mrb[25].mxu0 }
 0x227   : > { %v4486_v42 = vpop.f32.mrb[26].mxu0 }
 0x228   : > { %v4488_v62 = vpop.f32.mrb[27].mxu0 }
 0x22d   : > { %v4490_v24 = vpop.f32.mrb[28].mxu0 }
 0x22e   : > { %v3304_v10 = vpop.f32.mrb[16].mxu1  ;;  %v4492_v13 = vpop.f32.mrb[29].mxu0 }
 0x22f   : > { %v3370_v0 = vadd.f32 %v3338_v54, %v3304_v10  ;;  %v2304_v16 = vpop.f32.mrb[17].mxu1  ;;  %v4494_v17 = vpop.f32.mrb[30].mxu0 }
 0x230   : > { %v3371_v32 = vadd.f32 %v2475_v48, %v2304_v16  ;;  %v3305_v59 = vpop.f32.mrb[18].mxu1  ;;  %v4496_v37 = vpop.f32.mrb[31].mxu0 }
 0x231   : > { %v2595_v4 = vadd.f32 %v3370_v0, %v4343_v53  ;;  %v3372_v3 = vadd.f32 %v3339_v46, %v3305_v59  ;;  %v2307_v20 = vpop.f32.mrb[19].mxu1 }
 0x232   : > { %v2593_v21 = vadd.f32 %v3371_v32, %v4343_v53  ;;  %v3373_v22 = vadd.f32 %v2478_v41, %v2307_v20 }
 0x233   : > { %v2628_v49 = vmul.f32 %v4345_v63, %v2595_v4  ;;  %v2596_v23 = vadd.f32 %v3372_v3, %v4343_v53 }
 0x234   : > { %v2626_v56 = vmul.f32 %v4345_v63, %v2593_v21  ;;  %v2594_v5 = vadd.f32 %v3373_v22, %v4343_v53 }
 0x235   : > { %2660 = vst.msk [vmem:[%s4353_s8 + $0x90] sm:$0xff] %vm1950_vm12, %v2628_v49  ;;  %v2706_v43 = vsel %vm1950_vm12, %v2628_v49, inf  ;;  %v2781_v55 = vsel %vm1950_vm12, %v2628_v49, -inf  ;;  %v2629_v9 = vmul.f32 %v4345_v63, %v2596_v23 }
 0x236   : > { %v4509_v25 = vmin.f32 %v2699_v1, %v2706_v43  ;;  %v4511_v60 = vmax.f32 %v2774_v39, %v2781_v55  ;;  %2658 = vst.msk [vmem:[%s4353_s8 + $0x80] sm:$0xff] %vm1950_vm12, %v2626_v56  ;;  %v2702_v26 = vsel %vm1950_vm12, %v2626_v56, inf  ;;  %v2777_v18 = vsel %vm1950_vm12, %v2626_v56, -inf  ;;  %v3308_v30 = vpop.f32.mrb[20].mxu1 }
 0x237   : > { %v4517_v19 = vmin.f32 %v2695_v40, %v2702_v26  ;;  %v4519_v27 = vmax.f32 %v2770_v35, %v2777_v18  ;;  %2661 = vst.msk [vmem:[%s4353_s8 + $0x98] sm:$0xff] %vm1950_vm12, %v2629_v9  ;;  %v2708_v28 = vsel %vm1950_vm12, %v2629_v9, inf  ;;  %v2783_v45 = vsel %vm1950_vm12, %v2629_v9, -inf  ;;  %v2320_v34 = vpop.f32.mrb[21].mxu1 }
 0x238   : > { %v4525_v50 = vmin.f32 %v2701_v29, %v2708_v28  ;;  %v4527_v54 = vmax.f32 %v2776_v15, %v2783_v45  ;;  %v2627_v58 = vmul.f32 %v4345_v63, %v2594_v5  ;;  %v3374_v47 = vadd.f32 %v3342_v14, %v3308_v30  ;;  %v3309_v48 = vpop.f32.mrb[22].mxu1 }
 0x239   : > { %v3375_v8 = vadd.f32 %v2491_v6, %v2320_v34  ;;  %v3376_v11 = vadd.f32 %v3343_v7, %v3309_v48  ;;  %v2323_v36 = vpop.f32.mrb[23].mxu1 }
 0x23a   : > { %2659 = vst.msk [vmem:[%s4353_s8 + $0x88] sm:$0xff] %vm1950_vm12, %v2627_v58  ;;  %v2704_v61 = vsel %vm1950_vm12, %v2627_v58, inf  ;;  %v2779_v46 = vsel %vm1950_vm12, %v2627_v58, -inf  ;;  %v2599_v1 = vadd.f32 %v3374_v47, %v4343_v53  ;;  %v3377_v39 = vadd.f32 %v2494_v12, %v2323_v36 }
 0x23b   : > { %v4535_v40 = vmin.f32 %v2697_v33, %v2704_v61  ;;  %v4537_v35 = vmax.f32 %v2772_v31, %v2779_v46  ;;  %v2597_v41 = vadd.f32 %v3375_v8, %v4343_v53  ;;  %v2600_v52 = vadd.f32 %v3376_v11, %v4343_v53 }
 0x23c   : > { %v2632_v38 = vmul.f32 %v4345_v63, %v2599_v1  ;;  %v2598_v57 = vadd.f32 %v3377_v39, %v4343_v53 }
 0x23d   : > { %v2630_v2 = vmul.f32 %v4345_v63, %v2597_v41  ;;  %v2633_v29 = vmul.f32 %v4345_v63, %v2600_v52 }
 0x23e   : > { %2664 = vst.msk [vmem:[%s4353_s8 + $0xb0] sm:$0xff] %vm1950_vm12, %v2632_v38  ;;  %v4548_v15 = vsel %vm1950_vm12, %v2632_v38, inf  ;;  %v2789_v33 = vsel %vm1950_vm12, %v2632_v38, -inf  ;;  %v2631_v31 = vmul.f32 %v4345_v63, %v2598_v57  ;;  %v3312_v14 = vpop.f32.mrb[24].mxu1 }
 0x23f   : > { %2662 = vst.msk [vmem:[%s4353_s8 + $0xa0] sm:$0xff] %vm1950_vm12, %v2630_v2  ;;  %v2710_v6 = vsel %vm1950_vm12, %v2630_v2, inf  ;;  %v2785_v7 = vsel %vm1950_vm12, %v2630_v2, -inf  ;;  %2665 = vst.msk [vmem:[%s4353_s8 + $0xb8] sm:$0xff] %vm1950_vm12, %v2633_v29  ;;  %v2716_v12 = vsel %vm1950_vm12, %v2633_v29, inf  ;;  %v2791_v10 = vsel %vm1950_vm12, %v2633_v29, -inf }
 0x240   : > { %v2336_v0 = vpop.f32.mrb[25].mxu1  ;;  %2663 = vst.msk [vmem:[%s4353_s8 + $0xa8] sm:$0xff] %vm1950_vm12, %v2631_v31  ;;  %v2712_v16 = vsel %vm1950_vm12, %v2631_v31, inf  ;;  %v2787_v32 = vsel %vm1950_vm12, %v2631_v31, -inf  ;;  %v3378_v59 = vadd.f32 %v4482_v44, %v3312_v14  ;;  %v2786_v22 = vmax.f32 %v4519_v27, %v2785_v7 }
 0x241   : > { %v3379_v4 = vadd.f32 %v4484_v51, %v2336_v0  ;;  %v3313_v3 = vpop.f32.mrb[26].mxu1  ;;  %v2788_v49 = vmax.f32 %v4537_v35, %v2787_v32  ;;  %v2790_v23 = vmax.f32 %v4511_v60, %v2789_v33  ;;  %v2792_v51 = vmax.f32 %v4527_v54, %v2791_v10 }
 0x242   : > { %v3380_v20 = vadd.f32 %v4486_v42, %v3313_v3  ;;  %v2339_v21 = vpop.f32.mrb[27].mxu1  ;;  %v2603_v56 = vadd.f32 %v3378_v59, %v4343_v53  ;;  %v2711_v42 = vmin.f32 %v4517_v19, %v2710_v6  ;;  %v2713_v55 = vmin.f32 %v4535_v40, %v2712_v16 }
 0x243   : > { %v2601_v5 = vadd.f32 %v3379_v4, %v4343_v53  ;;  %v3381_v44 = vadd.f32 %v4488_v62, %v2339_v21  ;;  %v2715_v9 = vmin.f32 %v4509_v25, %v4548_v15  ;;  %v2717_v62 = vmin.f32 %v4525_v50, %v2716_v12 }
 0x244   : > { %v2604_v43 = vadd.f32 %v3380_v20, %v4343_v53  ;;  %v2636_v60 = vmul.f32 %v4345_v63, %v2603_v56 }
 0x245   : > { %v2634_v26 = vmul.f32 %v4345_v63, %v2601_v5  ;;  %v2602_v18 = vadd.f32 %v3381_v44, %v4343_v53 }
 0x246   : > { %v2637_v30 = vmul.f32 %v4345_v63, %v2604_v43  ;;  %2668 = vst.msk [vmem:[%s4353_s8 + $0xd0] sm:$0xff] %vm1950_vm12, %v2636_v60  ;;  %v3316_v27 = vpop.f32.mrb[28].mxu1  ;;  %v2797_v28 = vsel %vm1950_vm12, %v2636_v60, -inf  ;;  %v2722_v52 = vsel %vm1950_vm12, %v2636_v60, inf }
 0x247   : > { %2666 = vst.msk [vmem:[%s4353_s8 + $0xc0] sm:$0xff] %vm1950_vm12, %v2634_v26  ;;  %v2635_v19 = vmul.f32 %v4345_v63, %v2602_v18  ;;  %v2793_v25 = vsel %vm1950_vm12, %v2634_v26, -inf  ;;  %v2718_v45 = vsel %vm1950_vm12, %v2634_v26, inf  ;;  %v3382_v34 = vadd.f32 %v4490_v24, %v3316_v27  ;;  %v2352_v50 = vpop.f32.mrb[29].mxu1 }
 0x248   : > { %2669 = vst.msk [vmem:[%s4353_s8 + $0xd8] sm:$0xff] %vm1950_vm12, %v2637_v30  ;;  %v2794_v54 = vmax.f32 %v2786_v22, %v2793_v25  ;;  %v2798_v58 = vmax.f32 %v2790_v23, %v2797_v28  ;;  %v2799_v47 = vsel %vm1950_vm12, %v2637_v30, -inf  ;;  %v3383_v48 = vadd.f32 %v4492_v13, %v2352_v50  ;;  %v3317_v8 = vpop.f32.mrb[30].mxu1 }
 0x249   : > { %2667 = vst.msk [vmem:[%s4353_s8 + $0xc8] sm:$0xff] %vm1950_vm12, %v2635_v19  ;;  %v2795_v11 = vsel %vm1950_vm12, %v2635_v19, -inf  ;;  %v2800_v36 = vmax.f32 %v2792_v51, %v2799_v47  ;;  %v2719_v61 = vmin.f32 %v2711_v42, %v2718_v45  ;;  %v2607_v46 = vadd.f32 %v3382_v34, %v4343_v53  ;;  %v2355_v24 = vpop.f32.mrb[31].mxu1 }
 0x24a   : > { %v3384_v1 = vadd.f32 %v4494_v17, %v3317_v8  ;;  %v2796_v39 = vmax.f32 %v2788_v49, %v2795_v11  ;;  %v2720_v40 = vsel %vm1950_vm12, %v2635_v19, inf  ;;  %v2605_v35 = vadd.f32 %v3383_v48, %v4343_v53 }
 0x24b   : > { %v3385_v41 = vadd.f32 %v4496_v37, %v2355_v24  ;;  %v2721_v13 = vmin.f32 %v2713_v55, %v2720_v40  ;;  %v2640_v38 = vmul.f32 %v4345_v63, %v2607_v46  ;;  %v2723_v2 = vmin.f32 %v2715_v9, %v2722_v52 }
 0x24c   : > { %v2608_v57 = vadd.f32 %v3384_v1, %v4343_v53  ;;  %v2724_v17 = vsel %vm1950_vm12, %v2637_v30, inf  ;;  %v2638_v29 = vmul.f32 %v4345_v63, %v2605_v35 }
 0x24d   : > { %v2606_v15 = vadd.f32 %v3385_v41, %v4343_v53  ;;  %v2725_v33 = vmin.f32 %v2717_v62, %v2724_v17  ;;  %2672 = vst.msk [vmem:[%s4353_s8 + $0xf0] sm:$0xff] %vm1950_vm12, %v2640_v38  ;;  %v2805_v31 = vsel %vm1950_vm12, %v2640_v38, -inf  ;;  %v2730_v14 = vsel %vm1950_vm12, %v2640_v38, inf }
 0x24e   : > { %v2641_v37 = vmul.f32 %v4345_v63, %v2608_v57  ;;  %2670 = vst.msk [vmem:[%s4353_s8 + $0xe0] sm:$0xff] %vm1950_vm12, %v2638_v29  ;;  %v2801_v7 = vsel %vm1950_vm12, %v2638_v29, -inf  ;;  %v2806_v12 = vmax.f32 %v2798_v58, %v2805_v31  ;;  %v2726_v10 = vsel %vm1950_vm12, %v2638_v29, inf }
 0x24f   : > { %v2639_v6 = vmul.f32 %v4345_v63, %v2606_v15  ;;  %v2802_v53 = vmax.f32 %v2794_v54, %v2801_v7  ;;  %v2727_v16 = vmin.f32 %v2719_v61, %v2726_v10  ;;  %v2731_v32 = vmin.f32 %v2723_v2, %v2730_v14 }
 0x250   : > { %2673 = vst.msk [vmem:[%s4353_s8 + $0xf8] sm:$0xff] %vm1950_vm12, %v2641_v37  ;;  %v2807_v0 = vsel %vm1950_vm12, %v2641_v37, -inf  ;;  %v2732_v63 = vsel %vm1950_vm12, %v2641_v37, inf }
 0x251   : > { %2671 = vst.msk [vmem:[%s4353_s8 + $0xe8] sm:$0xff] %vm1950_vm12, %v2639_v6  ;;  %v2803_v59 = vsel %vm1950_vm12, %v2639_v6, -inf  ;;  %v2808_v4 = vmax.f32 %v2800_v36, %v2807_v0  ;;  %v2728_v3 = vsel %vm1950_vm12, %v2639_v6, inf  ;;  %v2733_v22 = vmin.f32 %v2725_v33, %v2732_v63 }
 0x252   : > { %v2804_v20 = vmax.f32 %v2796_v39, %v2803_v59  ;;  %v2729_v21 = vmin.f32 %v2721_v13, %v2728_v3 }
 0x253   : > { %v2810_v49 = vmax.f32 %v2806_v12, %v2808_v4  ;;  %v2735_v5 = vmin.f32 %v2731_v32, %v2733_v22 }
 0x254   : > { %v2809_v23 = vmax.f32 %v2802_v53, %v2804_v20  ;;  %v2734_v56 = vmin.f32 %v2727_v16, %v2729_v21 }
 0x256   : > { %v2811_v44 = vmax.f32 %v2809_v23, %v2810_v49  ;;  %v2736_v51 = vmin.f32 %v2734_v56, %v2735_v5 }
 0x258   : > { %2812 = vmax.xlane.f32.xlu1 %v2811_v44  ;;  %2737 = vmin.xlane.f32.xlu0 %v2736_v51 }
 0x2e5   : > { %v2813_v43 = vpop.xlane.xlu1 %2812  ;;  %v2738_v42 = vpop.xlane.xlu0 %2737 }
 0x2e6   : > { %v2814_v55 = vrot.slane %v2813_v43, 4  ;;  %v2739_v9 = vrot.slane %v2738_v42, 4 }
 0x2e8   : > { %v2815_v60 = vmax.f32 %v2813_v43, %v2814_v55  ;;  %v2740_v26 = vmin.f32 %v2738_v42, %v2739_v9 }
 0x2ea   : > { %v2816_v18 = vrot.slane %v2815_v60, 2  ;;  %v2741_v62 = vrot.slane %v2740_v26, 2 }
 0x2ec   : > { %v2817_v30 = vmax.f32 %v2815_v60, %v2816_v18  ;;  %v2742_v19 = vmin.f32 %v2740_v26, %v2741_v62 }
 0x2ee   : > { %v2743_v27 = vrot.slane %v2742_v19, 1  ;;  %v2818_v25 = vrot.slane %v2817_v30, 1 }
 0x2f0   : > { %v2744_v28 = vmin.f32 %v2742_v19, %v2743_v27  ;;  %v2819_v45 = vmax.f32 %v2817_v30, %v2818_v25 }
 0x2f2   : > { %3454 = vpush %v2744_v28 }
 0x2f3   : > { %3456 = vpush %v2819_v45 }
 0x323   : > { %s3455_s12 = spop %3454 }
 0x324   : > { %v2746_v34 = vstv %s3455_s12  ;;  %s3457_s16 = spop %3456 }
 0x325   : > { %2748 = vst.msk [vmem:[%s317_s11] sm:$0x1] %vm2747_vm15, %v2746_v34  ;;  %v2821_v50 = vstv %s3457_s16 }
 0x326   : > { %2822 = vst.msk [vmem:[%s323_s15] sm:$0x1] %vm2747_vm15, %v2821_v50 }
 0x327 PF: > { %s18_s23 = sadd.s32 1, %s3586_s23   ;;  %s4663_s21 = smov %s3582_s22 }
 0x328   : > { %p15_p2 = scmp.ge.s32.totalorder %s18_s23, 4   ;;  %s4664_s22 = smov %s4666_s25 }
 0x32a   :  { %17 = sbr.rel (!%p15_p2) target bundleno = 2 (0x2), region = 117 }
 0x331   :  { %2891 = vsyncpa [#allocation4], 1 }
 0x332   :  { %2893 = vsyncpa [#allocation4 + $0x1], 1 }

</bundles_post_ra>
